<compile_context>
chip_gen: v7x
topology: tpu7x:2x2x1
jax: 0.10.0
libtpu: 0.0.40
codegen_flags: <defaults>
</compile_context>

<pallas_src>
import functools

import jax
import jax.numpy as jnp
from jax import lax
from jax.experimental import pallas as pl
from jax.experimental.pallas import tpu as pltpu


def _bsconvu_kernel(x_ref, wpw_ref, wdw_ref, b_ref, o_ref, *, tile_h, W):
    """One (image, row-tile) step: out = dw3x3(pw1x1(x)) + bias, fused in VMEM.

    x_ref  : (1, Cin, (H+2)*W)  whole row-padded image, spatially flattened;
                                constant over the row-tile grid axis, so it is
                                DMA'd once per image and stays VMEM resident.
    wpw_ref: (Cout, Cin)        pointwise 1x1 weight (compute dtype).
    wdw_ref: (Cout, 9)          depthwise 3x3 weight, taps flattened (3*dh+dw), f32.
    b_ref  : (Cout, 1)          depthwise bias, f32.
    o_ref  : (1, Cout, tile_h*W) output row-tile, channel-major.
    """
    t = pl.program_id(1)
    He = tile_h + 2                      # rows incl. the 1-row halo on each side
    HeW = He * W
    ThW = tile_h * W

    # ---- this tile's padded row window: aligned dynamic lane slice ----------
    start = t * ThW
    if ThW % 128 == 0:
        start = pl.multiple_of(start, 128)
    x_ext = x_ref[0, :, pl.ds(start, HeW)]                    # (Cin, He*W)

    # ---- pointwise 1x1 conv: one MXU matmul, f32 accumulation ---------------
    # TODO(synk): for very small Cin it may be worth doing this as Cin
    # broadcast-FMAs on the VPU instead of paying MXU fill/drain for K=Cin.
    y = jnp.dot(wpw_ref[...], x_ext,
                preferred_element_type=jnp.float32)           # (Cout, He*W)

    # ---- depthwise 3x3 with 'same' zero padding ------------------------------
    # Row halos are physically present in y (x was row-padded in the wrapper),
    # so only the image left/right column edges need masking.  Two pre-masked
    # copies make each of the 9 taps a single XLU roll + one VPU FMA.
    col = lax.broadcasted_iota(jnp.int32, y.shape, 1) % W
    y_left_nb = jnp.where(col <= W - 2, y, 0.0)    # source for taps reading w-1
    y_right_nb = jnp.where(col >= 1, y, 0.0)       # source for taps reading w+1
    srcs = (y_left_nb, y, y_right_nb)              # indexed by dw

    wdw = wdw_ref[...]                             # (Cout, 9), read once
    acc = jnp.zeros(y.shape, jnp.float32)
    for dh in range(3):
        for dw in range(3):
            s = (dh - 1) * W + (dw - 1)            # tap[j] = y[j + s]
            src = srcs[dw]
            tap = src if s == 0 else pltpu.roll(src, (-s) % HeW, axis=1)
            c = 3 * dh + dw
            acc = acc + tap * wdw[:, c:c + 1]      # per-channel (sublane) scale

    # Keep the tile_h central rows, add bias, store channel-major (lane axis
    # tile_h*W is a multiple of 128 -> unmasked stores).
    out = acc[:, W:W + ThW] + b_ref[...]
    o_ref[0] = out.astype(o_ref.dtype)


def _pick_tile_h(H, W, Cout, budget_bytes=4 * 1024 * 1024):
    """Largest divisor of H whose per-tile f32 working set fits the budget.

    Tiles other than the whole image must have a 128-aligned lane width
    (tile_h * W % 128 == 0) so output blocks stay legal and stores unmasked.
    """
    divisors = [d for d in range(1, H + 1) if H % d == 0]
    aligned = [d for d in divisors if d == H or (d * W) % 128 == 0]
    for d in sorted(aligned, reverse=True):
        # y + 2 pre-masked copies + acc over (d+2) rows, plus the output tile.
        work = 4 * Cout * (d + 2) * W * 4 + Cout * d * W * 4
        if work <= budget_bytes:
            return d
    return min(aligned)


def bsconvu_forward(x_nchw, pw_weight, dw_weight, dw_bias, *,
                    tile_h=None, compute_dtype=jnp.bfloat16):
    """BSConvU forward: NCHW in -> NCHW out (same semantics as the PyTorch module).

    pw_weight: (Cout, Cin, 1, 1)  pointwise conv, no bias
    dw_weight: (Cout, 1, 3, 3)    depthwise conv (groups=Cout), pad 1, stride 1
    dw_bias  : (Cout,)
    """
    N, Cin, H, W = x_nchw.shape
    Cout = pw_weight.shape[0]
    assert dw_weight.shape == (Cout, 1, 3, 3)
    # TODO(synk): only the module defaults (3x3, stride 1, dilation 1, zero
    # 'same' padding) are implemented; other configs need a different kernel.

    if tile_h is None:
        tile_h = _pick_tile_h(H, W, Cout)
    assert H % tile_h == 0
    nt = H // tile_h
    assert nt == 1 or (tile_h * W) % 128 == 0, "tiled blocks must be 128-lane aligned"

    # Row-pad once (zero halo for the depthwise) and flatten the spatial dims.
    # Both are layout-preserving for NCHW -- no HBM transpose round trips.
    xp = jnp.pad(x_nchw, ((0, 0), (0, 0), (1, 1), (0, 0)))
    xp = xp.reshape(N, Cin, (H + 2) * W).astype(compute_dtype)

    wpw = pw_weight[:, :, 0, 0].astype(compute_dtype)           # (Cout, Cin)
    wdw = dw_weight.reshape(Cout, 9).astype(jnp.float32)        # tap index = 3*dh+dw
    b = dw_bias.reshape(Cout, 1).astype(jnp.float32)

    kernel = functools.partial(_bsconvu_kernel, tile_h=tile_h, W=W)
    out = pl.pallas_call(
        kernel,
        out_shape=jax.ShapeDtypeStruct((N, Cout, H * W), jnp.float32),
        grid_spec=pltpu.PrefetchScalarGridSpec(
            num_scalar_prefetch=0,
            grid=(N, nt),                            # N * (H / tile_h) pipeline steps
            in_specs=[
                # Whole padded image per step; constant over the row-tile axis.
                pl.BlockSpec((1, Cin, (H + 2) * W), lambda n, t: (n, 0, 0)),
                pl.BlockSpec((Cout, Cin), lambda n, t: (0, 0)),
                pl.BlockSpec((Cout, 9), lambda n, t: (0, 0)),
                pl.BlockSpec((Cout, 1), lambda n, t: (0, 0)),
            ],
            out_specs=pl.BlockSpec((1, Cout, tile_h * W), lambda n, t: (n, 0, t)),
        ),
        compiler_params=pltpu.CompilerParams(
            dimension_semantics=("parallel", "parallel"),
            vmem_limit_bytes=64 * 1024 * 1024,
        ),
    )(xp, wpw, wdw, b)

    return out.reshape(N, Cout, H, W)


def _reference_forward(x_nchw, pw_weight, dw_weight, dw_bias):
    """Precision-controlled pure-JAX reference (pw 1x1 no bias -> dw 3x3 'same' + bias)."""
    N, Cin, H, W = x_nchw.shape
    Cout = pw_weight.shape[0]
    y = jnp.einsum("nchw,oc->nohw", x_nchw, pw_weight[:, :, 0, 0],
                   precision=lax.Precision.HIGHEST)
    yp = jnp.pad(y, ((0, 0), (0, 0), (1, 1), (1, 1)))
    out = jnp.zeros_like(y)
    for dh in range(3):
        for dw in range(3):
            k = dw_weight[:, 0, dh, dw].reshape(1, Cout, 1, 1)
            out = out + yp[:, :, dh:dh + H, dw:dw + W] * k
    return out + dw_bias.reshape(1, Cout, 1, 1)


def init_params(key, in_ch, out_ch):
    """Deterministic synthetic weights in PyTorch conv layouts."""
    k1, k2, k3 = jax.random.split(key, 3)
    bound_pw = 1.0 / jnp.sqrt(float(in_ch))          # fan_in of 1x1 conv
    bound_dw = 1.0 / 3.0                             # fan_in of depthwise 3x3 = 9
    pw_w = jax.random.uniform(k1, (out_ch, in_ch, 1, 1), jnp.float32,
                              -bound_pw, bound_pw)
    dw_w = jax.random.uniform(k2, (out_ch, 1, 3, 3), jnp.float32,
                              -bound_dw, bound_dw)
    dw_b = jax.random.uniform(k3, (out_ch,), jnp.float32, -bound_dw, bound_dw)
    return pw_w, dw_w, dw_b


if __name__ == "__main__":
    N, Cin, H, W = 2, 4, 16, 16
    Cout = 64

    key = jax.random.PRNGKey(0)
    key, kx = jax.random.split(key)
    x = jax.random.normal(kx, (N, Cin, H, W), jnp.float32)
    pw_w, dw_w, dw_b = init_params(key, Cin, Cout)

    # tile_h=8 -> grid = (N=2, H/tile_h=2) = 4 pipeline steps at this toy size.
    out = jax.block_until_ready(bsconvu_forward(x, pw_w, dw_w, dw_b, tile_h=8))
    assert out.shape == (N, Cout, H, W), out.shape

    # The kernel feeds the MXU bf16 x / pw-weight (f32 accumulation), so the
    # reference is evaluated on identically bf16-quantized inputs in f32.
    xq = x.astype(jnp.bfloat16).astype(jnp.float32)
    pwq = pw_w.astype(jnp.bfloat16).astype(jnp.float32)
    ref = jax.block_until_ready(_reference_forward(xq, pwq, dw_w, dw_b))
    max_err = float(jnp.max(jnp.abs(out - ref)))
    assert jnp.allclose(out, ref, atol=1e-4, rtol=1e-4), max_err

    # Also exercise the auto-picked (whole-image, nt=1) tiling path once.
    out_whole = jax.block_until_ready(bsconvu_forward(x, pw_w, dw_w, dw_b))
    max_err2 = float(jnp.max(jnp.abs(out_whole - ref)))
    assert jnp.allclose(out_whole, ref, atol=1e-4, rtol=1e-4), max_err2

    print("KERNEL_OK")
</pallas_src>

<mosaic_0001>
module attributes {stable_mosaic.version = 11 : i64} {
  func.func @_bsconvu_kernel(%arg0: i32, %arg1: i32, %arg2: memref<1x4x288xbf16, #tpu.memory_space<vmem>>, %arg3: memref<64x4xbf16, #tpu.memory_space<vmem>>, %arg4: memref<64x9xf32, #tpu.memory_space<vmem>>, %arg5: memref<64x1xf32, #tpu.memory_space<vmem>>, %arg6: memref<1x64x128xf32, #tpu.memory_space<vmem>>) attributes {dimension_semantics = [#tpu.dimension_semantics<parallel>, #tpu.dimension_semantics<parallel>], iteration_bounds = array<i64: 2, 2>, scalar_prefetch = 0 : i64, scratch_operands = 0 : i64, tpu.core_type = #tpu.core_type<tc>, window_params = [{transform_indices = @transform_0, window_bounds = array<i64: 1, 4, 288>}, {pipeline_mode = #tpu.pipeline_mode<synchronous>, transform_indices = @transform_1, window_bounds = array<i64: 64, 4>}, {pipeline_mode = #tpu.pipeline_mode<synchronous>, transform_indices = @transform_2, window_bounds = array<i64: 64, 9>}, {pipeline_mode = #tpu.pipeline_mode<synchronous>, transform_indices = @transform_3, window_bounds = array<i64: 64, 1>}, {transform_indices = @transform_4, window_bounds = array<i64: 1, 64, 128>}]} {
    %c128_i32 = arith.constant 128 : i32
    %0 = arith.muli %arg1, %c128_i32 : i32
    %1 = tpu.assume_multiple %0, 128 : i32
    %c0 = arith.constant 0 : index
    %c0_0 = arith.constant 0 : index
    %2 = arith.index_cast %1 : i32 to index
    %3 = vector.load %arg2[%c0, %c0_0, %2] : memref<1x4x288xbf16, #tpu.memory_space<vmem>>, vector<1x4x160xbf16>
    %4 = vector.shape_cast %3 : vector<1x4x160xbf16> to vector<4x160xbf16>
    %c0_1 = arith.constant 0 : index
    %c0_2 = arith.constant 0 : index
    %5 = vector.load %arg3[%c0_1, %c0_2] : memref<64x4xbf16, #tpu.memory_space<vmem>>, vector<64x4xbf16>
    %cst = arith.constant dense<0.000000e+00> : vector<64x160xf32>
    %6 = tpu.matmul %5, %4, %cst {dimension_numbers = #tpu.dot_dimension_numbers<[1], [0], [0], [1], [0, 0, 1, 1], [], []>} : vector<64x4xbf16>, vector<4x160xbf16>, vector<64x160xf32> -> vector<64x160xf32>
    %7 = tpu.iota {dimensions = array<i32: 1>} : vector<64x160xi32>
    %c16_i32 = arith.constant 16 : i32
    %c0_i32 = arith.constant 0 : i32
    %8 = arith.cmpi eq, %c16_i32, %c0_i32 : i32
    %c1_i32 = arith.constant 1 : i32
    %9 = arith.select %8, %c1_i32, %c16_i32 : i32
    %10 = vector.broadcast %9 : i32 to vector<64x160xi32>
    %11 = arith.remsi %7, %10 : vector<64x160xi32>
    %c0_i32_3 = arith.constant 0 : i32
    %12 = vector.broadcast %c0_i32_3 : i32 to vector<64x160xi32>
    %13 = arith.cmpi ne, %11, %12 : vector<64x160xi32>
    %c0_i32_4 = arith.constant 0 : i32
    %14 = vector.broadcast %c0_i32_4 : i32 to vector<64x160xi32>
    %15 = arith.cmpi slt, %11, %14 : vector<64x160xi32>
    %c0_i32_5 = arith.constant 0 : i32
    %16 = arith.cmpi slt, %9, %c0_i32_5 : i32
    %17 = vector.broadcast %16 : i1 to vector<64x160xi1>
    %18 = vector.broadcast %17 : vector<64x160xi1> to vector<64x160xi1>
    %19 = arith.xori %15, %18 : vector<64x160xi1>
    %20 = arith.andi %19, %13 : vector<64x160xi1>
    %21 = vector.broadcast %9 : i32 to vector<64x160xi32>
    %22 = arith.addi %11, %21 : vector<64x160xi32>
    %23 = arith.select %20, %22, %11 : vector<64x160xi1>, vector<64x160xi32>
    %c14_i32 = arith.constant 14 : i32
    %24 = vector.broadcast %c14_i32 : i32 to vector<64x160xi32>
    %25 = arith.cmpi sle, %23, %24 : vector<64x160xi32>
    %cst_6 = arith.constant 0.000000e+00 : f32
    %26 = vector.broadcast %cst_6 : f32 to vector<64x160xf32>
    %27 = arith.select %25, %6, %26 : vector<64x160xi1>, vector<64x160xf32>
    %c1_i32_7 = arith.constant 1 : i32
    %28 = vector.broadcast %c1_i32_7 : i32 to vector<64x160xi32>
    %29 = arith.cmpi sge, %23, %28 : vector<64x160xi32>
    %cst_8 = arith.constant 0.000000e+00 : f32
    %30 = vector.broadcast %cst_8 : f32 to vector<64x160xf32>
    %31 = arith.select %29, %6, %30 : vector<64x160xi1>, vector<64x160xf32>
    %c0_9 = arith.constant 0 : index
    %c0_10 = arith.constant 0 : index
    %32 = vector.load %arg4[%c0_9, %c0_10] : memref<64x9xf32, #tpu.memory_space<vmem>>, vector<64x9xf32>
    %cst_11 = arith.constant 0.000000e+00 : f32
    %33 = vector.broadcast %cst_11 : f32 to vector<64x160xf32>
    %c17_i32 = arith.constant 17 : i32
    %34 = tpu.dynamic_rotate %27 by %c17_i32 dim 1 : vector<64x160xf32>, i32 -> vector<64x160xf32>
    %35 = vector.extract_strided_slice %32 {offsets = [0, 0], sizes = [64, 1], strides = [1, 1]} : vector<64x9xf32> to vector<64x1xf32>
    %36 = vector.broadcast %35 : vector<64x1xf32> to vector<64x160xf32>
    %37 = arith.mulf %34, %36 : vector<64x160xf32>
    %38 = arith.addf %33, %37 : vector<64x160xf32>
    %c16_i32_12 = arith.constant 16 : i32
    %39 = tpu.dynamic_rotate %6 by %c16_i32_12 dim 1 : vector<64x160xf32>, i32 -> vector<64x160xf32>
    %40 = vector.extract_strided_slice %32 {offsets = [0, 1], sizes = [64, 1], strides = [1, 1]} : vector<64x9xf32> to vector<64x1xf32>
    %41 = vector.broadcast %40 : vector<64x1xf32> to vector<64x160xf32>
    %42 = arith.mulf %39, %41 : vector<64x160xf32>
    %43 = arith.addf %38, %42 : vector<64x160xf32>
    %c15_i32 = arith.constant 15 : i32
    %44 = tpu.dynamic_rotate %31 by %c15_i32 dim 1 : vector<64x160xf32>, i32 -> vector<64x160xf32>
    %45 = vector.extract_strided_slice %32 {offsets = [0, 2], sizes = [64, 1], strides = [1, 1]} : vector<64x9xf32> to vector<64x1xf32>
    %46 = vector.broadcast %45 : vector<64x1xf32> to vector<64x160xf32>
    %47 = arith.mulf %44, %46 : vector<64x160xf32>
    %48 = arith.addf %43, %47 : vector<64x160xf32>
    %c1_i32_13 = arith.constant 1 : i32
    %49 = tpu.dynamic_rotate %27 by %c1_i32_13 dim 1 : vector<64x160xf32>, i32 -> vector<64x160xf32>
    %50 = vector.extract_strided_slice %32 {offsets = [0, 3], sizes = [64, 1], strides = [1, 1]} : vector<64x9xf32> to vector<64x1xf32>
    %51 = vector.broadcast %50 : vector<64x1xf32> to vector<64x160xf32>
    %52 = arith.mulf %49, %51 : vector<64x160xf32>
    %53 = arith.addf %48, %52 : vector<64x160xf32>
    %54 = vector.extract_strided_slice %32 {offsets = [0, 4], sizes = [64, 1], strides = [1, 1]} : vector<64x9xf32> to vector<64x1xf32>
    %55 = vector.broadcast %54 : vector<64x1xf32> to vector<64x160xf32>
    %56 = arith.mulf %6, %55 : vector<64x160xf32>
    %57 = arith.addf %53, %56 : vector<64x160xf32>
    %c159_i32 = arith.constant 159 : i32
    %58 = tpu.dynamic_rotate %31 by %c159_i32 dim 1 : vector<64x160xf32>, i32 -> vector<64x160xf32>
    %59 = vector.extract_strided_slice %32 {offsets = [0, 5], sizes = [64, 1], strides = [1, 1]} : vector<64x9xf32> to vector<64x1xf32>
    %60 = vector.broadcast %59 : vector<64x1xf32> to vector<64x160xf32>
    %61 = arith.mulf %58, %60 : vector<64x160xf32>
    %62 = arith.addf %57, %61 : vector<64x160xf32>
    %c145_i32 = arith.constant 145 : i32
    %63 = tpu.dynamic_rotate %27 by %c145_i32 dim 1 : vector<64x160xf32>, i32 -> vector<64x160xf32>
    %64 = vector.extract_strided_slice %32 {offsets = [0, 6], sizes = [64, 1], strides = [1, 1]} : vector<64x9xf32> to vector<64x1xf32>
    %65 = vector.broadcast %64 : vector<64x1xf32> to vector<64x160xf32>
    %66 = arith.mulf %63, %65 : vector<64x160xf32>
    %67 = arith.addf %62, %66 : vector<64x160xf32>
    %c144_i32 = arith.constant 144 : i32
    %68 = tpu.dynamic_rotate %6 by %c144_i32 dim 1 : vector<64x160xf32>, i32 -> vector<64x160xf32>
    %69 = vector.extract_strided_slice %32 {offsets = [0, 7], sizes = [64, 1], strides = [1, 1]} : vector<64x9xf32> to vector<64x1xf32>
    %70 = vector.broadcast %69 : vector<64x1xf32> to vector<64x160xf32>
    %71 = arith.mulf %68, %70 : vector<64x160xf32>
    %72 = arith.addf %67, %71 : vector<64x160xf32>
    %c143_i32 = arith.constant 143 : i32
    %73 = tpu.dynamic_rotate %31 by %c143_i32 dim 1 : vector<64x160xf32>, i32 -> vector<64x160xf32>
    %74 = vector.extract_strided_slice %32 {offsets = [0, 8], sizes = [64, 1], strides = [1, 1]} : vector<64x9xf32> to vector<64x1xf32>
    %75 = vector.broadcast %74 : vector<64x1xf32> to vector<64x160xf32>
    %76 = arith.mulf %73, %75 : vector<64x160xf32>
    %77 = arith.addf %72, %76 : vector<64x160xf32>
    %78 = vector.extract_strided_slice %77 {offsets = [0, 16], sizes = [64, 128], strides = [1, 1]} : vector<64x160xf32> to vector<64x128xf32>
    %c0_14 = arith.constant 0 : index
    %c0_15 = arith.constant 0 : index
    %79 = vector.load %arg5[%c0_14, %c0_15] : memref<64x1xf32, #tpu.memory_space<vmem>>, vector<64x1xf32>
    %80 = vector.broadcast %79 : vector<64x1xf32> to vector<64x128xf32>
    %81 = arith.addf %78, %80 : vector<64x128xf32>
    %c0_16 = arith.constant 0 : index
    %c0_17 = arith.constant 0 : index
    %c0_18 = arith.constant 0 : index
    %82 = vector.load %arg6[%c0_16, %c0_17, %c0_18] : memref<1x64x128xf32, #tpu.memory_space<vmem>>, vector<1x64x128xf32>
    %83 = vector.shape_cast %82 : vector<1x64x128xf32> to vector<64x128xf32>
    %84 = vector.shape_cast %81 : vector<64x128xf32> to vector<1x64x128xf32>
    tpu.vector_store %arg6[%c0_16, %c0_17, %c0_18], %84 {strides = array<i32>} : memref<1x64x128xf32, #tpu.memory_space<vmem>>, vector<1x64x128xf32>,
    return
  }
  func.func @transform_0(%arg0: i32, %arg1: i32) -> (i32, i32, i32) {
    %c0_i32 = arith.constant 0 : i32
    %c0_i32_0 = arith.constant 0 : i32
    %c0_i32_1 = arith.constant 0 : i32
    return %arg0, %c0_i32, %c0_i32_0 : i32, i32, i32
  }
  func.func @transform_1(%arg0: i32, %arg1: i32) -> (i32, i32) {
    %c0_i32 = arith.constant 0 : i32
    %c0_i32_0 = arith.constant 0 : i32
    %c0_i32_1 = arith.constant 0 : i32
    return %c0_i32, %c0_i32_0 : i32, i32
  }
  func.func @transform_2(%arg0: i32, %arg1: i32) -> (i32, i32) {
    %c0_i32 = arith.constant 0 : i32
    %c0_i32_0 = arith.constant 0 : i32
    %c0_i32_1 = arith.constant 0 : i32
    return %c0_i32, %c0_i32_0 : i32, i32
  }
  func.func @transform_3(%arg0: i32, %arg1: i32) -> (i32, i32) {
    %c0_i32 = arith.constant 0 : i32
    %c0_i32_0 = arith.constant 0 : i32
    %c0_i32_1 = arith.constant 0 : i32
    return %c0_i32, %c0_i32_0 : i32, i32
  }
  func.func @transform_4(%arg0: i32, %arg1: i32) -> (i32, i32, i32) {
    %c0_i32 = arith.constant 0 : i32
    %c0_i32_0 = arith.constant 0 : i32
    return %arg0, %c0_i32, %arg1 : i32, i32, i32
  }
}

</mosaic_0001>

<bundles_post_ra>
// kernel: tpu_custom_call.1
= control target key start
LH: loop header
LB: loop body
LE: loop exit
PB: predicated region body
PF: predicated region fallthrough
CT: control target
= control target key end

     0   :  { %s4408_s0 = inlined_call_operand.hbm [shape: bf16[2,4,288], index: 0, kind: input, shape index: {}]   ;;  %s4409_s1 = inlined_call_operand.hbm [shape: bf16[64,4], index: 1, kind: input, shape index: {}]   ;;  %s4410_s2 = inlined_call_operand.hbm [shape: f32[64,9], index: 2, kind: input, shape index: {}]   ;;  %s4411_s3 = inlined_call_operand.hbm [shape: f32[64,1], index: 3, kind: input, shape index: {}]   ;;  %s4412_s4 = inlined_call_operand.hbm [shape: f32[2,64,256], index: 4, kind: output, shape index: {}]  }
   0x1   :  { %4542 = sst [smem:[#allocation122_spill]] %s4409_s1 }
   0x2   :  { %4543 = sst [smem:[#allocation123_spill]] %s4410_s2 }
   0x3   :  { %4544 = sst [smem:[#allocation124_spill]] %s4411_s3 }
   0x4   :  { %4545 = sst [smem:[#allocation125_spill]] %s4412_s4 }
   0x5   :  { %9 = vsyncpa [#allocation3], 0 }
   0x6   :  { %11 = vsyncpa [#allocation3 + $0x1], 0 }
   0x7   :  { %12 = vsyncpa [#allocation6], 0 }
   0x8   :  { %13 = vsyncpa [#allocation9], 0 }
   0x9   :  { %14 = vsyncpa [#allocation4], 0 }
   0xa   :  { %16 = vsyncpa [#allocation4 + $0x1], 0  ;;  %s2500_s15 = smov 0   ;;  %s2502_s16 = smov 0  }
   0xb   :  { %s2504_s17 = smov 0   ;;  %s2506_s18 = smov 0  }
   0xc   :  { %s2508_s19 = smov 0   ;;  %s2510_s20 = smov 0  }
   0xd   :  { %s2512_s21 = smov 0   ;;  %s2514_s22 = smov 0  }
   0xe   :  { %s2516_s23 = smov 0   ;;  %s2518_s24 = smov 0  }
   0xf   :  { %s2520_s25 = smov 0  }
  0x10 LB: > { %4546 = sst [smem:[#allocation15_spill]] %s2405_s15  ;;  %s1987_s26 = sadd.s32 4294967295, %s2445_s25   ;;  %s2445_s25 = sphi %s2520_s25, %s22_s25   ;;  %s2441_s24 = sphi %s2518_s24, %s4864_s24   ;;  %s2437_s23 = sphi %s2516_s23, %s4863_s23   ;;  %s2433_s22 = sphi %s2514_s22, %s4862_s22   ;;  %s2429_s21 = sphi %s2512_s21, %s4861_s21   ;;  %s2425_s20 = sphi %s2510_s20, %s4860_s20   ;;  %s2421_s19 = sphi %s2508_s19, %s4859_s19   ;;  %s2417_s18 = sphi %s2506_s18, %s4858_s18   ;;  %s2413_s17 = sphi %s2504_s17, %s4857_s17   ;;  %s2409_s16 = sphi %s2502_s16, %s4856_s16   ;;  %s2405_s15 = sphi %s2500_s15, %s4855_s15  }
  0x11   : > { %s1988_s27 = sadd.s32 4294967294, %s2445_s25   ;;  %p54_p0 = scmp.ne.s32.totalorder %s2421_s19, %s2417_s18 }
  0x12   : > { %p2556_p1 = scmp.eq.s32.totalorder %s1987_s26, 0  ;;  %p142_p2 = scmp.ne.s32.totalorder %s2413_s17, %s2409_s16 }
  0x13   : > { %p143_p3 = scmp.eq.s32.totalorder %s1987_s26, 3  ;;  %p148_p5 = scmp.ne.s32.totalorder %s2409_s16, %s2405_s15 }
  0x14   : > { %s4547_s28 = scalar_select %p2556_p1, 1, 0 }
  0x15   : > { %p2564_p4 = por %p2556_p1, %p54_p0  ;;  %p2570_p6 = por %p143_p3, %p142_p2 }
  0x16   : > { %p149_p7 = scmp.eq.s32.totalorder %s1988_s27, 3  ;;  %p1989_p8 = scmp.ge.s32.totalorder %s2445_s25, 1 }
  0x17   : > { %s4548_s29 = scalar_select %p2564_p4, 1, 0 }
  0x18   : > { %s4549_s30 = scalar_select %p2570_p6, 1, 0 }
  0x19   : > { %p156_p9 = scmp.lt.s32.totalorder %s2445_s25, 5  ;;  %p2576_p10 = por %p149_p7, %p148_p5 }
  0x1a   : > { %4550 = sst [smem:[#allocation16_spill]] %s4549_s30  ;;  %s2447_s7 = smov [#allocation5]  }
  0x1b   : > { %s4551_s5 = scalar_select %p2576_p10, 1, 0 }
  0x1c   : > { %p2580_p11 = pnand %p1989_p8, %p156_p9  ;;  %s168_s8 = sshll.u32 %s2447_s7, 4  ;;  %s169_s8 = int_to_ptr.vmem [resolvable:$true] %s168_s8 }
  0x1d   : > { %4552 = sst [smem:[#allocation17_spill]] %s4551_s5  ;;  %s2448_s10 = smov [#allocation7]  }
  0x1e   : > { %s4553_s6 = scalar_select %p2580_p11, 1, 0 }
  0x1f   : > { %p2038_p12 = pneg %p2580_p11  ;;  %s181_s11 = sshll.u32 %s2448_s10, 4  ;;  %s2592_s11 = int_to_ptr.vmem [resolvable:$true] %s181_s11 }
  0x20   : > { %s4555_s1 = sld [smem:[#allocation122_spill]] }
  0x21   : > { %p2588_p13 = pnand %p2038_p12, %p2556_p1 }
  0x23   : > { %p2602_p2 = pneg %p2588_p13 }
  0x26   : > { %s2201_s14 = scalar_lea.hbm %s4555_s1, 512 }
  0x27   : > { %p2202_p0 = scmp.ne.s32.totalorder %s4555_s1, %s2201_s14  ;;  %p2208_p7 = scmp.lt.u32.totalorder %s2201_s14, %s4555_s1 }
  0x29   : > { %p2204_p3 = pnand %p2602_p2, %p2202_p0 }
  0x2b   : > { %p2205_p5 = pneg %p2204_p3 }
  0x2d   : > { %p2210_p8 = pnand %p2208_p7, %p2205_p5 }
  0x2f   : > { %2213 = shalt.err (!%p2210_p8)
}
  0x30   : > { %s2214_s12 = scalar_lea.vmem %s169_s8, 512  ;;  %p2222_p6 = scmp.lt.s32.totalorder %s169_s8, %s169_s8 }
  0x31   : > { %p2215_p9 = scmp.ne.s32.totalorder %s169_s8, %s2214_s12  ;;  %p2223_p1 = scmp.lt.s32.totalorder %s2214_s12, %s2214_s12 }
  0x33   : > { %p2217_p12 = pnand %p2215_p9, %p2602_p2  ;;  %p2224_p4 = por %p2223_p1, %p2222_p6 }
  0x35   : > { %p2218_p10 = pneg %p2217_p12 }
  0x37   : > { %p2225_p11 = pnand %p2224_p4, %p2218_p10 }
  0x39   : > { %2228 = shalt.err (!%p2225_p11)
}
  0x3a   : > { %s2449_s13 = smov 64   ;;  %s2450_s18 = smov 4  }
  0x3b   : > { %2041 = dma.hbm_to_vmem [thread:$0]  (!%p2588_p13), %s4555_s1, 512, %s169_s8, [#allocation6], %s2449_s13, %s2449_s13, %s2450_s18  }
  0x3c   : > { %s4557_s2 = sld [smem:[#allocation123_spill]] }
  0x42   : > { %s2229_s5 = scalar_lea.hbm %s4557_s2, 1024 }
  0x43   : > { %p2230_p0 = scmp.ne.s32.totalorder %s4557_s2, %s2229_s5  ;;  %p2236_p6 = scmp.lt.u32.totalorder %s2229_s5, %s4557_s2 }
  0x45   : > { %p2232_p1 = pnand %p2230_p0, %p2602_p2 }
  0x47   : > { %p2233_p4 = pneg %p2232_p1 }
  0x49   : > { %p2238_p10 = pnand %p2236_p6, %p2233_p4 }
  0x4b   : > { %2241 = shalt.err (!%p2238_p10)
}
  0x4c   : > { %s2242_s8 = scalar_lea.vmem %s2592_s11, 1024  ;;  %p2250_p7 = scmp.lt.s32.totalorder %s2592_s11, %s2592_s11 }
  0x4d   : > { %p2243_p11 = scmp.ne.s32.totalorder %s2592_s11, %s2242_s8  ;;  %p2251_p8 = scmp.lt.s32.totalorder %s2242_s8, %s2242_s8 }
  0x4f   : > { %p2245_p3 = pnand %p2243_p11, %p2602_p2  ;;  %p2252_p9 = por %p2251_p8, %p2250_p7 }
  0x51   : > { %p2246_p5 = pneg %p2245_p3 }
  0x53   : > { %p2253_p12 = pnand %p2252_p9, %p2246_p5 }
  0x55   : > { %2256 = shalt.err (!%p2253_p12)
}
  0x56   : > { %s2451_s4 = smov 128   ;;  %s2452_s15 = smov 8  }
  0x57   : > { %2044 = dma.hbm_to_vmem [thread:$0]  (!%p2588_p13), %s4557_s2, 1024, %s2592_s11, [#allocation6], %s2451_s4, %s2451_s4, %s2452_s15  }
  0x58   : > { %s2453_s13 = smov [#allocation8]   ;;  %s4558_s3 = sld [smem:[#allocation124_spill]] }
  0x59   : > { %s194_s18 = sshll.u32 %s2453_s13, 4  ;;  %s195_s18 = int_to_ptr.vmem [resolvable:$true] %s194_s18 }
  0x5e   : > { %s2257_s7 = scalar_lea.hbm %s4558_s3, 1024 }
  0x5f   : > { %p2258_p0 = scmp.ne.s32.totalorder %s4558_s3, %s2257_s7  ;;  %p2264_p6 = scmp.lt.u32.totalorder %s2257_s7, %s4558_s3 }
  0x61   : > { %p2260_p1 = pnand %p2258_p0, %p2602_p2 }
  0x63   : > { %p2261_p4 = pneg %p2260_p1 }
  0x65   : > { %p2266_p10 = pnand %p2264_p6, %p2261_p4 }
  0x67   : > { %2269 = shalt.err (!%p2266_p10)
}
  0x68   : > { %s2270_s11 = scalar_lea.vmem %s195_s18, 1024  ;;  %p2278_p7 = scmp.lt.s32.totalorder %s195_s18, %s195_s18 }
  0x69   : > { %p2271_p11 = scmp.ne.s32.totalorder %s195_s18, %s2270_s11  ;;  %p2279_p8 = scmp.lt.s32.totalorder %s2270_s11, %s2270_s11 }
  0x6b   : > { %p2273_p3 = pnand %p2271_p11, %p2602_p2  ;;  %p2280_p9 = por %p2279_p8, %p2278_p7 }
  0x6d   : > { %p2274_p5 = pneg %p2273_p3 }
  0x6f   : > { %p2281_p12 = pnand %p2280_p9, %p2274_p5 }
  0x71   : > { %2284 = shalt.err (!%p2281_p12)
}
  0x72   : > { %2047 = dma.hbm_to_vmem [thread:$0]  (!%p2588_p13), %s4558_s3, 1024, %s195_s18, [#allocation9], %s2451_s4, %s2451_s4, %s2452_s15  }
  0x73   : > { %s31_s1 = sadd.s32 1, %s2437_s23  ;;  %s34_s27 = sadd.s32 1, %s2441_s24 }
  0x74   : > { %p32_p2 = scmp.ge.s32.totalorder %s31_s1, 2  ;;  %s41_s9 = sadd.s32 1, %s2425_s20 }
  0x75   : > { %p48_p0 = scmp.ne.s32.totalorder %s2425_s20, %s2421_s19  ;;  %p49_p1 = scmp.eq.s32.totalorder %s2445_s25, 0 }
  0x76   : > { %s4866_s1 = smov (%p32_p2, %s31_s1), 0  ;;  %s4868_s27 = smov (!%p32_p2, %s34_s27), %s2441_s24 }
  0x77   : > { %p2668_p4 = por %p49_p1, %p48_p0  ;;  %s128_s26 = ssub.s32 %s2437_s23, %s4866_s1 }
  0x78   : > { %p36_p13 = scmp.ge.s32.totalorder %s4868_s27, 2  ;;  %s132_s4 = sadd.s32 1, %s2413_s17 }
  0x79   : > { %p2059_p6 = scmp.lt.s32.totalorder %s2445_s25, 4  ;;  %s208_s15 = sand.u32 1, %s2425_s20  }
  0x7a   : > { %s4870_s27 = smov (%p36_p13, %s4868_s27), 0  ;;  %s2019_s18 = smul.u32 6, %s208_s15 }
  0x7b   : > { %s38_s14 = ssub.s32 %s2441_s24, %s4870_s27  ;;  %s2020_s7 = smul.u32 96, %s2441_s24 }
  0x7c   : > { %p39_p10 = scmp.eq.s32.totalorder %s38_s14, 0  ;;  %s129_s10 = sor.u32 %s128_s26, %s38_s14 }
  0x7d   : > { %p130_p11 = scmp.eq.s32.totalorder %s129_s10, 0  ;;  %s2691_s5 = scalar_lea.hbm %s4408_s0, %s2020_s7 }
  0x7e   : > { %s2683_s12 = scalar_select %p39_p10, %s2425_s20, %s41_s9  }
  0x7f   : > { %s2686_s8 = scalar_select %p130_p11, %s2413_s17, %s132_s4  }
  0x80   : > { %s212_s2 = scalar_lea.vmem [#allocation2], %s2019_s18  ;;  %p2699_p3 = pnand %p2059_p6, %p2668_p4 }
  0x81   : > { %s220_s3 = sshll.u32 %s212_s2, 4  ;;  %s209_s26 = scalar_lea.sflag [#allocation3], %s208_s15  ;;  %s2693_s3 = int_to_ptr.vmem [resolvable:$true] %s220_s3 }
  0x82   : > { %s2285_s4 = scalar_lea.hbm %s2691_s5, 96  ;;  %p2287_p7 = pneg %p2699_p3 }
  0x83   : > { %p2286_p5 = scmp.ne.s32.totalorder %s2691_s5, %s2285_s4  ;;  %s2290_s13 = scalar_lea.hbm %s4408_s0, 192 }
  0x84   : > { %p2291_p12 = scmp.lt.u32.totalorder %s2691_s5, %s4408_s0  ;;  %p2292_p2 = scmp.lt.u32.totalorder %s2290_s13, %s2285_s4 }
  0x85   : > { %p2288_p8 = pnand %p2287_p7, %p2286_p5  ;;  %p2294_p1 = scmp.lt.u32.totalorder %s2285_s4, %s2691_s5 }
  0x86   : > { %p2293_p0 = por %p2292_p2, %p2291_p12 }
  0x87   : > { %p2289_p9 = pneg %p2288_p8 }
  0x88   : > { %p2295_p4 = por %p2294_p1, %p2293_p0 }
  0x8a   : > { %p2296_p13 = pnand %p2295_p4, %p2289_p9 }
  0x8c   : > { %2299 = shalt.err (!%p2296_p13)
}
  0x8d   : > { %s2300_s15 = scalar_lea.vmem %s2693_s3, 96  ;;  %s2454_s10 = smov [#allocation2]  }
  0x8e   : > { %p2301_p6 = scmp.ne.s32.totalorder %s2693_s3, %s2300_s15  ;;  %s2305_s11 = sshll.u32 %s2454_s10, 4  ;;  %s2306_s11 = int_to_ptr.vmem [resolvable:$false] %s2305_s11 }
  0x8f   : > { %s2307_s30 = scalar_lea.vmem %s2306_s11, 192  ;;  %p2308_p5 = scmp.lt.s32.totalorder %s2693_s3, %s2306_s11 }
  0x90   : > { %p2303_p10 = pnand %p2301_p6, %p2287_p7  ;;  %p2309_p8 = scmp.lt.s32.totalorder %s2307_s30, %s2300_s15 }
  0x92   : > { %p2304_p11 = pneg %p2303_p10  ;;  %p2310_p12 = por %p2309_p8, %p2308_p5 }
  0x94   : > { %p2311_p2 = pnand %p2310_p12, %p2304_p11 }
  0x96   : > { %2314 = shalt.err (!%p2311_p2)
}
  0x97   : > { %2051 = dma.hbm_to_vmem [thread:$0]  (!%p2699_p3), %s2691_s5, 96, %s2693_s3, %s209_s26  }
  0x98   : > { %p4561_p9 = scmp.ne.s32.totalorder %s4553_s6, 0 }
  0x9a   : > { %229 = sbr.rel (%p4561_p9) target bundleno = 1068 (0x42c), region = 36 }
  0xa1   : > { %s231_s4 = sand.u32 1, %s2421_s19   ;;  %p4562_p7 = scmp.ne.s32.totalorder %s4548_s29, 0 }
  0xa2   : > { %s2021_s2 = smul.u32 6, %s231_s4  ;;  %s232_s18 = scalar_lea.sflag [#allocation3], %s231_s4 }
  0xa4   : > { %s235_s13 = scalar_lea.vmem [#allocation2], %s2021_s2 }
  0xa5   : > { %2388 = dma.done.wait (%p4562_p7), %s232_s18, 96  }
  0xa6   : > { %2390 = vsyncadd (%p4562_p7), %s232_s18, 4294967200  ;;  %p4563_p0 = scmp.ne.s32.totalorder %s4547_s28, 0 }
  0xa8   : > { %2392 = dma.done.wait (%p4563_p0), [#allocation6], 1536  }
  0xa9   : > { %2394 = vsyncadd (%p4563_p0), [#allocation6], 4294965760 }
  0xaa   : > { %2396 = dma.done.wait (%p4563_p0), [#allocation9], 1024  }
  0xab   : > { %2398 = vsyncadd (%p4563_p0), [#allocation9], 4294966272  ;;  %s2000_s3 = sshll.u32 %s2429_s21, 7  ;;  %v2455_v0 = vmov 1   ;;  %v4423_v1 = vmov 0   ;;  %vm329_vm0 = vcmask 1041408   ;;  %v409_v48 = vlaneseq }
  0xac   : > { %2180 = vset.pattern.permute.xlu0 %v2455_v0  ;;  %2178 = vset.pattern.permute.xlu1 %v4423_v1  ;;  %s274_s29 = sshra.s32 %s2000_s3, 7  ;;  %v2747_v2 = vld [vmem:[#allocation7 + $0x8] sm:$0xff]  ;;  %v2751_v6 = vld [vmem:[#allocation7 + $0x20] sm:$0xff]  ;;  %v2753_v7 = vld [vmem:[#allocation7 + $0x10] sm:$0xff]  ;;  %vm316_vm1 = vcmask 31744   ;;  %v2457_v14 = vmov 2  }
  0xad   : > { %s2001_s6 = sshll.u32 %s274_s29, 1  ;;  %368 = vmatprep.mubr.bf16.mxu0 %v4423_v1  ;;  %388 = vmatprep.mubr.bf16.mxu1 %v4423_v1  ;;  %4564 = vst [vmem:[#allocation18_spill] sm:$0xff] %v2751_v6  ;;  %v2197_v8 = vld [vmem:[#allocation5] sm:$0xff]   ;;  %v2198_v9 = vld [vmem:[#allocation5 + $0x10] sm:$0xff]   ;;  %v2199_v12 = vld [vmem:[#allocation5 + $0x8] sm:$0xff]   ;;  %v2458_v18 = vmov 3  }
  0xae   : > { %s277_s5 = scalar_lea.vmem %s235_s13, %s2001_s6 [#allocation2]  ;;  %654 = vperm.xlu0 %2180, %v2747_v2   ;;  %536 = vperm.xlu1 %2178, %v2747_v2   ;;  %v2757_v10 = vld [vmem:[#allocation7 + $0x30] sm:$0xff]  ;;  %v2765_v11 = vld [vmem:[#allocation7] sm:$0xff]  ;;  %v2200_v13 = vld [vmem:[#allocation5 + $0x18] sm:$0xff]   ;;  %v2459_v19 = vmov 4   ;;  %v2460_v20 = vmov 5   ;;  %v2461_v21 = vmov 6  }
  0xaf   : > { %v2006_v3 = vld.sshfl [vmem:[%s277_s5] sm:$0x33 pattern:$0x76325410]  ;;  %4565 = vst [vmem:[#allocation19_spill] sm:$0xff] %v2757_v10  ;;  %v2769_v15 = vld [vmem:[#allocation7 + $0x18] sm:$0xff] }
  0xb0   : > { %v315_v4 = vcombine.high %v2006_v3, %v2006_v3  ;;  %v331_v5 = vsel %vm329_vm0, %v2006_v3, 0  ;;  %v2775_v16 = vld [vmem:[#allocation7 + $0x28] sm:$0xff]  ;;  %v2779_v17 = vld [vmem:[#allocation7 + $0x38] sm:$0xff]  ;;  %v2462_v22 = vmov 7   ;;  %v2463_v35 = vmov 8   ;;  %s2464_s28 = smov 32  }
  0xb1   : > { %4566 = vst [vmem:[#allocation20_spill] sm:$0xff] %v2775_v16  ;;  %4567 = vst [vmem:[#allocation21_spill] sm:$0xff] %v2779_v17  ;;  %v410_v51 = vand.u32 127, %v409_v48  ;;  %s2465_s9 = smov 15   ;;  %s2466_s26 = smov 14   ;;  %vm480_vm6 = vcmask 1047808  }
  0xb2   : > { %2007 = vmatprep.subr.msk.bf16.mxu0 %vm329_vm0, %v315_v4  ;;  %2017 = vmatprep.subr.msk.bf16.mxu1 %vm329_vm0, %v315_v4  ;;  %s2467_s14 = smov 127   ;;  %s2468_s7 = smov 112   ;;  %vm745_vm7 = vcmask 1039360   ;;  %vm930_vm8 = vcmask 1031168   ;;  %vm1067_vm9 = vcmask 916480   ;;  %vm1204_vm10 = vcmask 121856  }
  0xb3   : > { %337 = vmatpush1.bf16.msra.mxu0 %v331_v5  ;;  %2018 = vmatpush1.bf16.msra.mxu1 %v331_v5  ;;  %v416_v54 = vand.u32 15, %v410_v51  ;;  %v411_v55 = vadd.s32 128, %v410_v51  ;;  %s2469_s15 = smov 126   ;;  %vm1341_vm11 = vcmask 113664   ;;  %s2470_s10 = smov 97   ;;  %vm1830_vm12 = vcmask 793600  }
  0xb4   : > { %666 = vperm.xlu0 %2180, %v2751_v6   ;;  %541 = vperm.xlu1 %2178, %v2753_v7   ;;  %s269_s11 = sand.u32 1, %s2409_s16   ;;  %s2013_s2 = sshll.u32 %s2433_s22, 4 }
  0xb5   : > { %vm2885_vm2 = vcmp.le.s32.totalorder %v416_v54, 14  ;;  %v423_v58 = vand.u32 15, %v411_v55  ;;  %vm2936_vm5 = vcmp.ge.s32.totalorder %v416_v54, 1  ;;  %s1999_s30 = sshll.u32 %s269_s11, 6  ;;  %s1867_s18 = sadd.s32 %s2429_s21, %s2013_s2 }
  0xb6   : > { %2008 = vmatmul.mubr.msk.bf16.vlgmr.msra.gmra.mrb[0].mxu0 %vm316_vm1, %v2197_v8  ;;  %2010 = vmatmul.mubr.msk.bf16.vlgmr.msra.gmra.mrb[0].mxu1 %vm316_vm1, %v2198_v9  ;;  %s4318_s4 = scalar_lea.vmem [#allocation10], %s1999_s30  ;;  %s4849_s13 = sld [smem:[#allocation16_spill]] }
  0xb7   : > { %378 = vmatprep.mubr.bf16.mxu0 %v4423_v1  ;;  %398 = vmatprep.mubr.bf16.mxu1 %v4423_v1  ;;  %vm2919_vm3 = vcmp.le.s32.totalorder %v423_v58, 14  ;;  %vm2925_vm4 = vcmp.ge.s32.totalorder %v423_v58, 1  ;;  %s1870_s3 = sshll.u32 %s4318_s4, 4  ;;  %s2014_s29 = sshll.u32 %s1867_s18, 7  ;;  %s4335_s3 = int_to_ptr.vmem [resolvable:$true] %s1870_s3 }
  0xb8   : > { %674 = vperm.xlu0 %2180, %v2757_v10   ;;  %551 = vperm.xlu1 %2178, %v2751_v6   ;;  %s4850_s5 = sld [smem:[#allocation125_spill]]  ;;  %s4347_s21 = scalar_lea.sflag [#allocation4], %s269_s11 }
  0xbc   : > { %2181 = vset.pattern.permute.xlu0 %v2457_v14  ;;  %561 = vperm.xlu1 %2178, %v2757_v10   ;;  %p4851_p1 = scmp.ne.s32.totalorder %s4849_s13, 0 }
  0xbd   : > { %835 = vperm.xlu0 %2181, %v2765_v11  }
  0xbe   : > { %2009 = vmatmul.mubr.msk.bf16.gmra.mrb[4].mxu0 %vm316_vm1, %v2199_v12  ;;  %2011 = vmatmul.mubr.msk.bf16.gmra.mrb[4].mxu1 %vm316_vm1, %v2200_v13 }
  0xc0   : > { %2179 = vset.pattern.permute.xlu1 %v2455_v0 }
  0xc1   : > { %847 = vperm.xlu0 %2181, %v2769_v15   ;;  %650 = vperm.xlu1 %2179, %v2765_v11  }
  0xc5   : > { %855 = vperm.xlu0 %2181, %v2775_v16   ;;  %658 = vperm.xlu1 %2179, %v2753_v7  }
  0xc9   : > { %863 = vperm.xlu0 %2181, %v2779_v17   ;;  %662 = vperm.xlu1 %2179, %v2769_v15  }
  0xcd   : > { %2184 = vset.pattern.permute.xlu0 %v2458_v18  ;;  %670 = vperm.xlu1 %2179, %v2775_v16  }
  0xce   : > { %976 = vperm.xlu0 %2184, %v2747_v2  }
  0xd1   : > { %678 = vperm.xlu1 %2179, %v2779_v17  }
  0xd2   : > { %988 = vperm.xlu0 %2184, %v2751_v6  }
  0xd5   : > { %2182 = vset.pattern.permute.xlu1 %v2457_v14 }
  0xd6   : > { %996 = vperm.xlu0 %2184, %v2757_v10   ;;  %839 = vperm.xlu1 %2182, %v2747_v2  }
  0xda   : > { %2185 = vset.pattern.permute.xlu0 %v2459_v19  ;;  %843 = vperm.xlu1 %2182, %v2753_v7  }
  0xdb   : > { %1109 = vperm.xlu0 %2185, %v2765_v11  }
  0xde   : > { %851 = vperm.xlu1 %2182, %v2751_v6  }
  0xdf   : > { %1121 = vperm.xlu0 %2185, %v2769_v15  }
  0xe2   : > { %859 = vperm.xlu1 %2182, %v2757_v10  }
  0xe3   : > { %1129 = vperm.xlu0 %2185, %v2775_v16  }
  0xe6   : > { %2183 = vset.pattern.permute.xlu1 %v2458_v18 }
  0xe7   : > { %1137 = vperm.xlu0 %2185, %v2779_v17   ;;  %972 = vperm.xlu1 %2183, %v2765_v11  }
  0xeb   : > { %2188 = vset.pattern.permute.xlu0 %v2460_v20  ;;  %980 = vperm.xlu1 %2183, %v2753_v7  }
  0xec   : > { %1250 = vperm.xlu0 %2188, %v2747_v2  }
  0xef   : > { %984 = vperm.xlu1 %2183, %v2769_v15  }
  0xf0   : > { %1262 = vperm.xlu0 %2188, %v2751_v6  }
  0xf3   : > { %992 = vperm.xlu1 %2183, %v2775_v16  }
  0xf4   : > { %1270 = vperm.xlu0 %2188, %v2757_v10  }
  0xf7   : > { %1000 = vperm.xlu1 %2183, %v2779_v17  }
  0xf8   : > { %2189 = vset.pattern.permute.xlu0 %v2461_v21 }
  0xf9   : > { %1383 = vperm.xlu0 %2189, %v2765_v11  }
  0xfb   : > { %2186 = vset.pattern.permute.xlu1 %v2459_v19 }
  0xfc   : > { %1113 = vperm.xlu1 %2186, %v2747_v2  }
  0xfd   : > { %1395 = vperm.xlu0 %2189, %v2769_v15  }
 0x100   : > { %1117 = vperm.xlu1 %2186, %v2753_v7  }
 0x101   : > { %1403 = vperm.xlu0 %2189, %v2775_v16  }
 0x104   : > { %1125 = vperm.xlu1 %2186, %v2751_v6  }
 0x105   : > { %1411 = vperm.xlu0 %2189, %v2779_v17  }
 0x108   : > { %1133 = vperm.xlu1 %2186, %v2757_v10  }
 0x109   : > { %2192 = vset.pattern.permute.xlu0 %v2462_v22 }
 0x10a   : > { %1451 = vperm.xlu0 %2192, %v2747_v2  }
 0x10c   : > { %2187 = vset.pattern.permute.xlu1 %v2460_v20 }
 0x10d   : > { %1246 = vperm.xlu1 %2187, %v2765_v11  }
 0x10e   : > { %1463 = vperm.xlu0 %2192, %v2751_v6  }
 0x111   : > { %1254 = vperm.xlu1 %2187, %v2753_v7  }
 0x112   : > { %1471 = vperm.xlu0 %2192, %v2757_v10  }
 0x115   : > { %1258 = vperm.xlu1 %2187, %v2769_v15  }
 0x116   : > { %2193 = vset.pattern.permute.xlu0 %v2463_v35 }
 0x119   : > { %1266 = vperm.xlu1 %2187, %v2775_v16  }
 0x11d   : > { %1274 = vperm.xlu1 %2187, %v2779_v17  }
 0x121   : > { %2190 = vset.pattern.permute.xlu1 %v2461_v21 }
 0x122   : > { %1387 = vperm.xlu1 %2190, %v2747_v2  }
 0x126   : > { %1391 = vperm.xlu1 %2190, %v2753_v7  }
 0x12a   : > { %1399 = vperm.xlu1 %2190, %v2751_v6  }
 0x12d   : > { %v2824_v23 = vpop.permute.xlu1 %536  ;;  %v2847_v32 = vpop.permute.xlu0 %654 }
 0x12e   : > { %1407 = vperm.xlu1 %2190, %v2757_v10   ;;  %4568 = vst [vmem:[#allocation22_spill] sm:$0xff] %v2824_v23 }
 0x132   : > { %2191 = vset.pattern.permute.xlu1 %v2462_v22 }
 0x133   : > { %1447 = vperm.xlu1 %2191, %v2765_v11   ;;  %v2827_v24 = vpop.permute.xlu1 %541  ;;  %v2851_v34 = vpop.permute.xlu0 %666 }
 0x134   : > { %4569 = vst [vmem:[#allocation23_spill] sm:$0xff] %v2827_v24 }
 0x137   : > { %1455 = vperm.xlu1 %2191, %v2753_v7   ;;  %v2830_v25 = vpop.permute.xlu1 %551  ;;  %v2857_v38 = vpop.permute.xlu0 %674 }
 0x138   : > { %4570 = vst [vmem:[#allocation24_spill] sm:$0xff] %v2830_v25 }
 0x13b   : > { %1459 = vperm.xlu1 %2191, %v2769_v15   ;;  %v2833_v26 = vpop.permute.xlu1 %561 }
 0x13c   : > { %4571 = vst [vmem:[#allocation25_spill] sm:$0xff] %v2833_v26  ;;  %v2861_v40 = vpop.permute.xlu0 %835 }
 0x13f   : > { %1467 = vperm.xlu1 %2191, %v2775_v16  }
 0x140   : > { %v2836_v27 = vpop.permute.xlu1 %650  ;;  %v2865_v42 = vpop.permute.xlu0 %847 }
 0x141   : > { %4572 = vst [vmem:[#allocation26_spill] sm:$0xff] %v2836_v27 }
 0x143   : > { %1475 = vperm.xlu1 %2191, %v2779_v17  }
 0x144   : > { %v2839_v28 = vpop.permute.xlu1 %658  ;;  %v2869_v44 = vpop.permute.xlu0 %855 }
 0x147   : > { %2194 = vset.pattern.permute.xlu1 %v2463_v35 }
 0x148   : > { %v2841_v29 = vpop.permute.xlu1 %662  ;;  %v2873_v46 = vpop.permute.xlu0 %863 }
 0x149   : > { %4573 = vst [vmem:[#allocation27_spill] sm:$0xff] %v2841_v29 }
 0x14c   : > { %v2843_v30 = vpop.permute.xlu1 %670 }
 0x14d   : > { %v2877_v49 = vpop.permute.xlu0 %976 }
 0x150   : > { %v2845_v31 = vpop.permute.xlu1 %678 }
 0x151   : > { %4574 = vst [vmem:[#allocation28_spill] sm:$0xff] %v2845_v31  ;;  %v2881_v52 = vpop.permute.xlu0 %988 }
 0x155   : > { %v2849_v33 = vpop.permute.xlu1 %839  ;;  %v2889_v57 = vpop.permute.xlu0 %996 }
 0x159   : > { %v2853_v36 = vpop.permute.xlu1 %843 }
 0x15a   : > { %v1110_v13 = vpop.permute.xlu0 %1109 }
 0x15d   : > { %v2855_v37 = vpop.permute.xlu1 %851 }
 0x15e   : > { %v3009_v26 = vpop.permute.xlu0 %1121 }
 0x161   : > { %v2859_v39 = vpop.permute.xlu1 %859 }
 0x162   : > { %v1130_v23 = vpop.permute.xlu0 %1129 }
 0x166   : > { %v2863_v41 = vpop.permute.xlu1 %972 }
 0x16a   : > { %v2867_v43 = vpop.permute.xlu1 %980 }
 0x16e   : > { %v2871_v45 = vpop.permute.xlu1 %984 }
 0x16f   : > { %4575 = vst [vmem:[#allocation29_spill] sm:$0xff] %v2871_v45 }
 0x172   : > { %v2875_v47 = vpop.permute.xlu1 %992 }
 0x176   : > { %v2879_v50 = vpop.permute.xlu1 %1000 }
 0x177   : > { %4576 = vst [vmem:[#allocation30_spill] sm:$0xff] %v2879_v50 }
 0x17b   : > { %v2883_v53 = vpop.permute.xlu1 %1113 }
 0x17f   : > { %v2891_v59 = vpop.permute.xlu1 %1117 }
 0x183   : > { %v1126_v21 = vpop.permute.xlu1 %1125 }
 0x189   : > { %v2893_v60 = vpop.f32.mrb[0].mxu0  ;;  %v2895_v61 = vpop.f32.mrb[0].mxu1 }
 0x18a   : > { %4579 = vst [vmem:[#allocation31_spill] sm:$0xff] %v2893_v60  ;;  %4580 = vst [vmem:[#allocation32_spill] sm:$0xff] %v2895_v61  ;;  %601 = vrot.lane.b32.xlu1 %v2893_v60, %s2464_s28  ;;  %v2899_v62 = vpop.f32.mrb[1].mxu0  ;;  %v2904_v63 = vsel %vm2885_vm2, %v2893_v60, 0.0  ;;  %v2906_v0 = vpop.f32.mrb[1].mxu1  ;;  %v2917_v5 = vsel %vm2885_vm2, %v2895_v61, 0.0  ;;  %v1140_v18 = vmul.f32 %v1110_v13, %v2893_v60  ;;  %v1148_v48 = vmul.f32 %v1126_v21, %v2895_v61 }
 0x18b   : > { %4581 = vst [vmem:[#allocation33_spill] sm:$0xff] %v2904_v63  ;;  %481 = vrot.lane.b32.xlu0 %v2904_v63, %s2464_s28  ;;  %v2910_v3 = vpop.f32.mrb[2].mxu0  ;;  %4583 = vst [vmem:[#allocation35_spill] sm:$0xff] %v2917_v5  ;;  %v2923_v9 = vpop.f32.mrb[2].mxu1  ;;  %v2972_v51 = vsel %vm2936_vm5, %v2893_v60, 0.0  ;;  %v1141_v10 = vmul.f32 %v1110_v13, %v2899_v62  ;;  %v1149_v6 = vmul.f32 %v1126_v21, %v2906_v0 }
 0x18c   : > { %4582 = vst [vmem:[#allocation34_spill] sm:$0xff] %v2910_v3  ;;  %v2912_v4 = vpop.f32.mrb[3].mxu0  ;;  %4586 = vst [vmem:[#allocation36_spill] sm:$0xff] %v2923_v9  ;;  %v2929_v14 = vpop.f32.mrb[3].mxu1  ;;  %v3017_v63 = vsel %vm2885_vm2, %v2923_v9, 0.0  ;;  %v3044_v25 = vsel %vm2936_vm5, %v2923_v9, 0.0  ;;  %v1142_v60 = vmul.f32 %v2883_v53, %v2910_v3  ;;  %v1150_v17 = vmul.f32 %v1130_v23, %v2923_v9 }
 0x18d   : > { %4592 = vst [vmem:[#allocation38_spill] sm:$0xff] %v2972_v51  ;;  %4596 = vst [vmem:[#allocation42_spill] sm:$0xff] %v3017_v63 }
 0x18e   : > { %613 = vrot.lane.b32.xlu1 %v2895_v61, %s2464_s28  ;;  %4598 = vst [vmem:[#allocation44_spill] sm:$0xff] %v3044_v25 }
 0x18f   : > { %493 = vrot.lane.b32.xlu0 %v2917_v5, %s2464_s28  ;;  %v2999_v5 = vsel %vm2936_vm5, %v2895_v61, 0.0  ;;  %v3057_v61 = vpop.permute.xlu1 %1133 }
 0x190   : > { %4595 = vst [vmem:[#allocation41_spill] sm:$0xff] %v2999_v5 }
 0x191   : > { %v2955_v54 = vpop.f32.mrb[4].mxu1  ;;  %v2957_v55 = vpop.f32.mrb[4].mxu0 }
 0x192   : > { %4591 = vst [vmem:[#allocation37_spill] sm:$0xff] %v2955_v54  ;;  %1172 = vrot.lane.b32.xlu1 %v1140_v18, %s2465_s9  ;;  %v2974_v35 = vpop.f32.mrb[5].mxu0  ;;  %v2976_v22 = vpop.f32.mrb[5].mxu1  ;;  %v3051_v18 = vsel %vm2885_vm2, %v2910_v3, 0.0  ;;  %v1144_v21 = vmul.f32 %v2891_v59, %v2957_v55  ;;  %v3149_v56 = vsel %vm2936_vm5, %v2957_v55, 0.0 }
 0x193   : > { %786 = vrot.lane.b32.xlu0 %v2972_v51, %s2464_s28  ;;  %v2980_v1 = vpop.f32.mrb[6].mxu1  ;;  %v2982_v58 = vpop.f32.mrb[6].mxu0  ;;  %4599 = vst [vmem:[#allocation45_spill] sm:$0xff] %v3051_v18  ;;  %4606 = vst [vmem:[#allocation52_spill] sm:$0xff] %v3149_v56 }
 0x194   : > { %4593 = vst [vmem:[#allocation39_spill] sm:$0xff] %v2980_v1  ;;  %4594 = vst [vmem:[#allocation40_spill] sm:$0xff] %v2982_v58  ;;  %v2985_v20 = vpop.f32.mrb[7].mxu0  ;;  %v2993_v24 = vpop.f32.mrb[7].mxu1 }
 0x196   : > { %1188 = vrot.lane.b32.xlu1 %v1148_v48, %s2465_s9  ;;  %v3035_v48 = vsel %vm2936_vm5, %v2910_v3, 0.0 }
 0x197   : > { %798 = vrot.lane.b32.xlu0 %v2999_v5, %s2464_s28  ;;  %4597 = vst [vmem:[#allocation43_spill] sm:$0xff] %v3035_v48 }
 0x19a   : > { %496 = vrot.lane.b32.xlu1 %v3017_v63, %s2464_s28  ;;  %v3055_v63 = vpop.permute.xlu0 %1137 }
 0x19b   : > { %604 = vrot.lane.b32.xlu0 %v2910_v3, %s2464_s28  ;;  %v1154_v19 = vmul.f32 %v3055_v63, %v2980_v1 }
 0x19e   : > { %789 = vrot.lane.b32.xlu1 %v3035_v48, %s2464_s28  ;;  %v3066_v16 = vpop.permute.xlu0 %1250 }
 0x19f   : > { %616 = vrot.lane.b32.xlu0 %v2923_v9, %s2464_s28  ;;  %v4640_v9 = vsel %vm2919_vm3, %v2912_v4, 0.0 }
 0x1a2   : > { %801 = vrot.lane.b32.xlu1 %v3044_v25, %s2464_s28 }
 0x1a3   : > { %484 = vrot.lane.b32.xlu0 %v3051_v18, %s2464_s28  ;;  %v3068_v18 = vpop.permute.xlu1 %1246 }
 0x1a4   : > { %v1277_v3 = vmul.f32 %v3068_v18, %v2972_v51 }
 0x1a6   : > { %1176 = vrot.lane.b32.xlu1 %v1142_v60, %s2465_s9 }
 0x1a7   : > { %1174 = vrot.lane.b32.xlu0 %v1141_v10, %s2465_s9  ;;  %v3077_v10 = vpop.permute.xlu0 %1262  ;;  %v3081_v13 = vpop.permute.xlu1 %1254 }
 0x1a8   : > { %v1285_v60 = vmul.f32 %v3077_v10, %v2999_v5  ;;  %v1152_v5 = vmul.f32 %v3057_v61, %v2955_v54 }
 0x1aa   : > { %1192 = vrot.lane.b32.xlu1 %v1150_v17, %s2465_s9  ;;  %v1143_v17 = vmul.f32 %v2883_v53, %v2912_v4  ;;  %v1279_v53 = vmul.f32 %v3066_v16, %v3035_v48 }
 0x1ab   : > { %1190 = vrot.lane.b32.xlu0 %v1149_v6, %s2465_s9  ;;  %v3089_v6 = vsel %vm2885_vm2, %v2957_v55, 0.0 }
 0x1ac   : > { %4600 = vst [vmem:[#allocation46_spill] sm:$0xff] %v3089_v6 }
 0x1ae   : > { %607 = vrot.lane.b32.xlu1 %v2957_v55, %s2464_s28 }
 0x1af   : > { %1309 = vrot.lane.b32.xlu0 %v1277_v3, %s2466_s26  ;;  %v3096_v3 = vpop.permute.xlu1 %1258 }
 0x1b2   : > { %619 = vrot.lane.b32.xlu1 %v2955_v54, %s2464_s28 }
 0x1b3   : > { %1325 = vrot.lane.b32.xlu0 %v1285_v60, %s2466_s26  ;;  %v1151_v60 = vmul.f32 %v1130_v23, %v2929_v14  ;;  %v3114_v23 = vsel %vm2885_vm2, %v2982_v58, 0.0 }
 0x1b4   : > { %4601 = vst [vmem:[#allocation47_spill] sm:$0xff] %v3114_v23 }
 0x1b6   : > { %487 = vrot.lane.b32.xlu1 %v3089_v6, %s2464_s28  ;;  %v3107_v6 = vpop.permute.xlu1 %1266 }
 0x1b7   : > { %1178 = vrot.lane.b32.xlu0 %v1143_v17, %s2465_s9  ;;  %v1287_v17 = vmul.f32 %v3107_v6, %v3044_v25  ;;  %v3171_v25 = vpop.permute.xlu0 %1270 }
 0x1ba   : > { %1180 = vrot.lane.b32.xlu1 %v1144_v21, %s2465_s9  ;;  %v3124_v21 = vsel %vm2885_vm2, %v2980_v1, 0.0 }
 0x1bb   : > { %1194 = vrot.lane.b32.xlu0 %v1151_v60, %s2465_s9  ;;  %4602 = vst [vmem:[#allocation48_spill] sm:$0xff] %v3124_v21  ;;  %v3131_v60 = vsel %vm2885_vm2, %v2955_v54, 0.0  ;;  %v3181_v51 = vpop.permute.xlu0 %1383 }
 0x1bc   : > { %4603 = vst [vmem:[#allocation49_spill] sm:$0xff] %v3131_v60  ;;  %4611 = vst [vmem:[#allocation57_spill] sm:$0xff] %v3181_v51 }
 0x1be   : > { %1196 = vrot.lane.b32.xlu1 %v1152_v5, %s2465_s9  ;;  %v3126_v5 = vpop.permute.xlu1 %1274 }
 0x1bf   : > { %1313 = vrot.lane.b32.xlu0 %v1279_v53, %s2466_s26  ;;  %v3140_v53 = vsel %vm2936_vm5, %v2982_v58, 0.0 }
 0x1c0   : > { %4604 = vst [vmem:[#allocation50_spill] sm:$0xff] %v3140_v53 }
 0x1c2   : > { %490 = vrot.lane.b32.xlu1 %v3114_v23, %s2464_s28  ;;  %v3163_v23 = vsel %vm2936_vm5, %v2955_v54, 0.0  ;;  %v3191_v54 = vpop.permute.xlu0 %1395 }
 0x1c3   : > { %1329 = vrot.lane.b32.xlu0 %v1287_v17, %s2466_s26  ;;  %v3142_v17 = vpop.permute.xlu1 %1387  ;;  %4608 = vst [vmem:[#allocation54_spill] sm:$0xff] %v3163_v23  ;;  %4613 = vst [vmem:[#allocation59_spill] sm:$0xff] %v3191_v54 }
 0x1c4   : > { %4605 = vst [vmem:[#allocation51_spill] sm:$0xff] %v3142_v17  ;;  %v1146_v17 = vmul.f32 %v3009_v26, %v2982_v58 }
 0x1c6   : > { %502 = vrot.lane.b32.xlu1 %v3124_v21, %s2464_s28  ;;  %v3156_v21 = vsel %vm2936_vm5, %v2980_v1, 0.0 }
 0x1c7   : > { %499 = vrot.lane.b32.xlu0 %v3131_v60, %s2464_s28  ;;  %4607 = vst [vmem:[#allocation53_spill] sm:$0xff] %v3156_v21  ;;  %v3167_v60 = vpop.permute.xlu1 %1391 }
 0x1c8   : > { %4609 = vst [vmem:[#allocation55_spill] sm:$0xff] %v3167_v60  ;;  %v1145_v60 = vmul.f32 %v2891_v59, %v2974_v35  ;;  %v3201_v59 = vpop.permute.xlu0 %1403 }
 0x1c9   : > { %4614 = vst [vmem:[#allocation60_spill] sm:$0xff] %v3201_v59 }
 0x1ca   : > { %795 = vrot.lane.b32.xlu1 %v3140_v53, %s2464_s28 }
 0x1cb   : > { %792 = vrot.lane.b32.xlu0 %v3149_v56, %s2464_s28  ;;  %v3178_v48 = vpop.permute.xlu1 %1399 }
 0x1cc   : > { %4610 = vst [vmem:[#allocation56_spill] sm:$0xff] %v3178_v48  ;;  %v1153_v48 = vmul.f32 %v3057_v61, %v2976_v22  ;;  %v3209_v61 = vpop.permute.xlu0 %1411 }
 0x1cd   : > { %4615 = vst [vmem:[#allocation61_spill] sm:$0xff] %v3209_v61 }
 0x1ce   : > { %807 = vrot.lane.b32.xlu1 %v3156_v21, %s2464_s28 }
 0x1cf   : > { %804 = vrot.lane.b32.xlu0 %v3163_v23, %s2464_s28 }
 0x1d2   : > { %1184 = vrot.lane.b32.xlu1 %v1146_v17, %s2465_s9  ;;  %v3189_v17 = vpop.permute.xlu1 %1407 }
 0x1d3   : > { %610 = vrot.lane.b32.xlu0 %v2982_v58, %s2464_s28  ;;  %4612 = vst [vmem:[#allocation58_spill] sm:$0xff] %v3189_v17 }
 0x1d6   : > { %1200 = vrot.lane.b32.xlu1 %v1154_v19, %s2465_s9  ;;  %v1281_v19 = vmul.f32 %v3081_v13, %v3149_v56  ;;  %v3199_v51 = vpop.permute.xlu1 %1447 }
 0x1d7   : > { %622 = vrot.lane.b32.xlu0 %v2980_v1, %s2464_s28 }
 0x1da   : > { %1587 = vperm.xlu1 %2194, %v2747_v2   ;;  %v1289_v2 = vmul.f32 %v3171_v25, %v3163_v23 }
 0x1db   : > { %1182 = vrot.lane.b32.xlu0 %v1145_v60, %s2465_s9  ;;  %v3207_v60 = vpop.permute.xlu1 %1455 }
 0x1de   : > { %1591 = vperm.xlu1 %2194, %v2753_v7   ;;  %v1147_v7 = vmul.f32 %v3009_v26, %v2985_v20  ;;  %v1291_v26 = vmul.f32 %v3126_v5, %v3156_v21 }
 0x1df   : > { %1198 = vrot.lane.b32.xlu0 %v1153_v48, %s2465_s9  ;;  %v1155_v48 = vmul.f32 %v3055_v63, %v2993_v24  ;;  %v3216_v54 = vpop.permute.xlu1 %1459 }
 0x1e0   : > { %4616 = vst [vmem:[#allocation62_spill] sm:$0xff] %v3216_v54  ;;  %v4643_v54 = vsel %vm2919_vm3, %v2929_v14, 0.0 }
 0x1e3   : > { %1317 = vrot.lane.b32.xlu0 %v1281_v19, %s2466_s26  ;;  %v3218_v19 = vpop.permute.xlu0 %1451  ;;  %v3224_v61 = vpop.permute.xlu1 %1467 }
 0x1e4   : > { %4617 = vst [vmem:[#allocation63_spill] sm:$0xff] %v3224_v61 }
 0x1e7   : > { %1333 = vrot.lane.b32.xlu0 %v1289_v2, %s2466_s26  ;;  %v1283_v2 = vmul.f32 %v3096_v3, %v3140_v53  ;;  %v3226_v17 = vpop.permute.xlu0 %1463  ;;  %v3231_v63 = vpop.permute.xlu1 %1475 }
 0x1e8   : > { %4618 = vst [vmem:[#allocation64_spill] sm:$0xff] %v3226_v17  ;;  %4619 = vst [vmem:[#allocation65_spill] sm:$0xff] %v3231_v63 }
 0x1eb   : > { %1186 = vrot.lane.b32.xlu0 %v1147_v7, %s2465_s9  ;;  %v3233_v7 = vpop.permute.xlu0 %1471 }
 0x1ec   : > { %4620 = vst [vmem:[#allocation66_spill] sm:$0xff] %v3233_v7 }
 0x1ef   : > { %1202 = vrot.lane.b32.xlu0 %v1155_v48, %s2465_s9  ;;  %s2315_s9 = scalar_lea.vmem %s4335_s3, 1024 }
 0x1f0   : > { %p2316_p3 = scmp.ne.s32.totalorder %s4335_s3, %s2315_s9 }
 0x1f2   : > { %p2317_p4 = pnand %p2316_p3, %p4851_p1 }
 0x1f3   : > { %1321 = vrot.lane.b32.xlu0 %v1283_v2, %s2466_s26 }
 0x1f4   : > { %p2318_p13 = pneg %p2317_p4 }
 0x1f7   : > { %1337 = vrot.lane.b32.xlu0 %v1291_v26, %s2466_s26  ;;  %v4623_v26 = vsel %vm2919_vm3, %v2899_v62, 0.0 }
 0x1fb   : > { %1583 = vperm.xlu0 %2193, %v2765_v11  }
 0x1fc   : > { %v3236_v48 = vpop.permute.xlu1 %601 }
 0x1fd   : > { %4621 = vst [vmem:[#allocation67_spill] sm:$0xff] %v3236_v48  ;;  %v3238_v59 = vpop.permute.xlu0 %481  ;;  %v3243_v2 = vsel %vm480_vm6, %v3236_v48, %v2899_v62 }
 0x1fe   : > { %4622 = vst [vmem:[#allocation68_spill] sm:$0xff] %v3238_v59  ;;  %625 = vrot.lane.b32.xlu1 %v3243_v2, %s2464_s28  ;;  %v3253_v21 = vsel %vm480_vm6, %v3238_v59, %v4623_v26  ;;  %v4627_v26 = vsel %vm2919_vm3, %v2906_v0, 0.0 }
 0x1ff   : > { %4624 = vst [vmem:[#allocation69_spill] sm:$0xff] %v3253_v21  ;;  %505 = vrot.lane.b32.xlu0 %v3253_v21, %s2464_s28 }
 0x200   : > { %v3257_v23 = vpop.permute.xlu1 %613 }
 0x201   : > { %4625 = vst [vmem:[#allocation70_spill] sm:$0xff] %v3257_v23  ;;  %v3259_v53 = vpop.permute.xlu0 %493  ;;  %v3264_v56 = vsel %vm480_vm6, %v3257_v23, %v2906_v0  ;;  %v4631_v23 = vsel %vm2925_vm4, %v2899_v62, 0.0 }
 0x202   : > { %4626 = vst [vmem:[#allocation71_spill] sm:$0xff] %v3259_v53  ;;  %633 = vrot.lane.b32.xlu1 %v3264_v56, %s2464_s28  ;;  %v3274_v59 = vsel %vm480_vm6, %v3259_v53, %v4627_v26 }
 0x203   : > { %4628 = vst [vmem:[#allocation72_spill] sm:$0xff] %v3274_v59  ;;  %513 = vrot.lane.b32.xlu0 %v3274_v59, %s2464_s28 }
 0x204   : > { %v3278_v48 = vpop.permute.xlu1 %1172 }
 0x205   : > { %4629 = vst [vmem:[#allocation73_spill] sm:$0xff] %v3278_v48  ;;  %v3280_v63 = vpop.permute.xlu0 %786  ;;  %v4634_v48 = vsel %vm2925_vm4, %v2906_v0, 0.0 }
 0x206   : > { %4630 = vst [vmem:[#allocation74_spill] sm:$0xff] %v3280_v63  ;;  %v3288_v1 = vsel %vm480_vm6, %v3280_v63, %v4631_v23 }
 0x207   : > { %810 = vrot.lane.b32.xlu0 %v3288_v1, %s2464_s28 }
 0x208   : > { %v3292_v26 = vpop.permute.xlu1 %1188 }
 0x209   : > { %4632 = vst [vmem:[#allocation75_spill] sm:$0xff] %v3292_v26  ;;  %v3294_v53 = vpop.permute.xlu0 %798 }
 0x20a   : > { %4633 = vst [vmem:[#allocation76_spill] sm:$0xff] %v3294_v53  ;;  %v3302_v7 = vsel %vm480_vm6, %v3294_v53, %v4634_v48  ;;  %v681_v53 = vmul.f32 %v2836_v27, %v3243_v2 }
 0x20b   : > { %4635 = vst [vmem:[#allocation77_spill] sm:$0xff] %v3302_v7  ;;  %818 = vrot.lane.b32.xlu0 %v3302_v7, %s2464_s28 }
 0x20c   : > { %v3306_v62 = vpop.permute.xlu1 %496 }
 0x20d   : > { %4636 = vst [vmem:[#allocation78_spill] sm:$0xff] %v3306_v62  ;;  %v3308_v23 = vpop.permute.xlu0 %604  ;;  %v3355_v58 = vsel %vm480_vm6, %v3306_v62, %v4643_v54 }
 0x20e   : > { %4637 = vst [vmem:[#allocation79_spill] sm:$0xff] %v3308_v23  ;;  %v3313_v26 = vsel %vm480_vm6, %v3308_v23, %v2912_v4  ;;  %4644 = vst [vmem:[#allocation84_spill] sm:$0xff] %v3355_v58 }
 0x20f   : > { %627 = vrot.lane.b32.xlu0 %v3313_v26, %s2464_s28 }
 0x210   : > { %v3317_v0 = vpop.permute.xlu1 %789 }
 0x211   : > { %v3319_v63 = vpop.permute.xlu0 %616 }
 0x212   : > { %4638 = vst [vmem:[#allocation80_spill] sm:$0xff] %v3319_v63  ;;  %v3324_v48 = vsel %vm480_vm6, %v3319_v63, %v2929_v14  ;;  %v689_v63 = vmul.f32 %v2851_v34, %v3264_v56 }
 0x213   : > { %635 = vrot.lane.b32.xlu0 %v3324_v48, %s2464_s28 }
 0x214   : > { %v3330_v23 = vpop.permute.xlu1 %801 }
 0x215   : > { %v3332_v61 = vpop.permute.xlu0 %484 }
 0x216   : > { %4639 = vst [vmem:[#allocation81_spill] sm:$0xff] %v3332_v61  ;;  %v3340_v17 = vsel %vm480_vm6, %v3332_v61, %v4640_v9  ;;  %v4647_v61 = vsel %vm2925_vm4, %v2912_v4, 0.0  ;;  %v4651_v4 = vsel %vm2925_vm4, %v2929_v14, 0.0  ;;  %v691_v14 = vmul.f32 %v2843_v30, %v3324_v48 }
 0x217   : > { %4641 = vst [vmem:[#allocation82_spill] sm:$0xff] %v3340_v17  ;;  %507 = vrot.lane.b32.xlu1 %v3340_v17, %s2464_s28  ;;  %713 = vrot.lane.b32.xlu0 %v681_v53, %s2467_s14  ;;  %v3372_v54 = vsel %vm480_vm6, %v3317_v0, %v4647_v61  ;;  %v3389_v61 = vsel %vm480_vm6, %v3330_v23, %v4651_v4 }
 0x218   : > { %v3357_v9 = vpop.permute.xlu1 %1176  ;;  %4648 = vst [vmem:[#allocation87_spill] sm:$0xff] %v3372_v54  ;;  %4652 = vst [vmem:[#allocation90_spill] sm:$0xff] %v3389_v61 }
 0x219   : > { %v3347_v27 = vpop.permute.xlu0 %1174  ;;  %4645 = vst [vmem:[#allocation85_spill] sm:$0xff] %v3357_v9 }
 0x21a   : > { %4642 = vst [vmem:[#allocation83_spill] sm:$0xff] %v3347_v27  ;;  %v1003_v27 = vmul.f32 %v2863_v41, %v3253_v21 }
 0x21b   : > { %515 = vrot.lane.b32.xlu1 %v3355_v58, %s2464_s28  ;;  %729 = vrot.lane.b32.xlu0 %v689_v63, %s2467_s14 }
 0x21c   : > { %v3377_v63 = vpop.permute.xlu1 %1192 }
 0x21d   : > { %v3362_v53 = vpop.permute.xlu0 %1190  ;;  %4649 = vst [vmem:[#allocation88_spill] sm:$0xff] %v3377_v63 }
 0x21e   : > { %4646 = vst [vmem:[#allocation86_spill] sm:$0xff] %v3362_v53  ;;  %v1011_v53 = vmul.f32 %v2881_v52, %v3274_v59 }
 0x21f   : > { %812 = vrot.lane.b32.xlu1 %v3372_v54, %s2464_s28  ;;  %1035 = vrot.lane.b32.xlu0 %v1003_v27, %s2468_s7  ;;  %v683_v27 = vmul.f32 %v2847_v32, %v3313_v26 }
 0x220   : > { %v3400_v59 = vpop.permute.xlu1 %607 }
 0x221   : > { %v3379_v9 = vpop.permute.xlu0 %1309 }
 0x222   : > { %4650 = vst [vmem:[#allocation89_spill] sm:$0xff] %v3379_v9  ;;  %v866_v9 = vmul.f32 %v2861_v40, %v3288_v1 }
 0x223   : > { %820 = vrot.lane.b32.xlu1 %v3389_v61, %s2464_s28  ;;  %1051 = vrot.lane.b32.xlu0 %v1011_v53, %s2468_s7  ;;  %v874_v53 = vmul.f32 %v2855_v37, %v3302_v7 }
 0x225   : > { %v3396_v63 = vpop.permute.xlu0 %1325 }
 0x226   : > { %4653 = vst [vmem:[#allocation91_spill] sm:$0xff] %v3396_v63  ;;  %v3412_v63 = vpop.permute.xlu1 %619 }
 0x227   : > { %898 = vrot.lane.b32.xlu1 %v866_v9, %s2469_s15  ;;  %717 = vrot.lane.b32.xlu0 %v683_v27, %s2467_s14  ;;  %4655 = vst [vmem:[#allocation93_spill] sm:$0xff] %v3412_v63  ;;  %v1278_v9 = vmul.f32 %v3068_v18, %v3288_v1  ;;  %v1005_v27 = vmul.f32 %v2877_v49, %v3340_v17  ;;  %v4669_v17 = vsel %vm2925_vm4, %v2976_v22, 0.0 }
 0x229   : > { %v3406_v4 = vpop.permute.xlu0 %1178 }
 0x22a   : > { %4654 = vst [vmem:[#allocation92_spill] sm:$0xff] %v3406_v4  ;;  %v3428_v62 = vpop.permute.xlu1 %487 }
 0x22b   : > { %914 = vrot.lane.b32.xlu1 %v874_v53, %s2469_s15  ;;  %733 = vrot.lane.b32.xlu0 %v691_v14, %s2467_s14  ;;  %v1286_v53 = vmul.f32 %v3077_v10, %v3302_v7  ;;  %v1013_v14 = vmul.f32 %v2875_v47, %v3355_v58  ;;  %4658 = vst [vmem:[#allocation96_spill] sm:$0xff] %v3428_v62 }
 0x22d   : > { %v3414_v21 = vpop.permute.xlu0 %1194 }
 0x22e   : > { %4656 = vst [vmem:[#allocation94_spill] sm:$0xff] %v3414_v21  ;;  %v4664_v21 = vsel %vm2919_vm3, %v2976_v22, 0.0 }
 0x22f   : > { %1311 = vrot.lane.b32.xlu1 %v1278_v9, %s2466_s26  ;;  %1039 = vrot.lane.b32.xlu0 %v1005_v27, %s2468_s7  ;;  %v868_v9 = vmul.f32 %v2849_v33, %v3372_v54  ;;  %v4660_v27 = vsel %vm2919_vm3, %v2974_v35, 0.0 }
 0x230   : > { %v3442_v10 = vsel %vm480_vm6, %v3428_v62, %v4660_v27 }
 0x231   : > { %v3422_v4 = vpop.permute.xlu0 %1313  ;;  %4661 = vst [vmem:[#allocation98_spill] sm:$0xff] %v3442_v10 }
 0x232   : > { %4657 = vst [vmem:[#allocation95_spill] sm:$0xff] %v3422_v4  ;;  %v4666_v4 = vsel %vm2925_vm4, %v2974_v35, 0.0 }
 0x233   : > { %1327 = vrot.lane.b32.xlu1 %v1286_v53, %s2466_s26  ;;  %1055 = vrot.lane.b32.xlu0 %v1013_v14, %s2468_s7  ;;  %v3447_v53 = vpop.permute.xlu1 %1180 }
 0x234   : > { %4662 = vst [vmem:[#allocation99_spill] sm:$0xff] %v3447_v53  ;;  %v1280_v53 = vmul.f32 %v3066_v16, %v3372_v54  ;;  %v1288_v16 = vmul.f32 %v3107_v6, %v3389_v61  ;;  %v3503_v6 = vsel %vm480_vm6, %v3400_v59, %v2974_v35 }
 0x235   : > { %v3432_v18 = vpop.permute.xlu0 %1329  ;;  %v685_v54 = vmul.f32 %v2839_v28, %v3503_v6 }
 0x236   : > { %4659 = vst [vmem:[#allocation97_spill] sm:$0xff] %v3432_v18  ;;  %v876_v18 = vmul.f32 %v2869_v44, %v3389_v61 }
 0x237   : > { %902 = vrot.lane.b32.xlu1 %v868_v9, %s2469_s15  ;;  %509 = vrot.lane.b32.xlu0 %v3442_v10, %s2464_s28 }
 0x239   : > { %v3449_v14 = vpop.permute.xlu0 %499 }
 0x23a   : > { %4663 = vst [vmem:[#allocation100_spill] sm:$0xff] %v3449_v14  ;;  %v3459_v27 = vsel %vm480_vm6, %v3449_v14, %v4664_v21  ;;  %v3476_v21 = vpop.permute.xlu1 %1196 }
 0x23b   : > { %4665 = vst [vmem:[#allocation101_spill] sm:$0xff] %v3459_v27  ;;  %918 = vrot.lane.b32.xlu1 %v876_v18, %s2469_s15  ;;  %517 = vrot.lane.b32.xlu0 %v3459_v27, %s2464_s28  ;;  %4668 = vst [vmem:[#allocation103_spill] sm:$0xff] %v3476_v21 }
 0x23d   : > { %v3464_v9 = vpop.permute.xlu0 %792 }
 0x23e   : > { %v3474_v58 = vsel %vm480_vm6, %v3464_v9, %v4666_v4 }
 0x23f   : > { %4667 = vst [vmem:[#allocation102_spill] sm:$0xff] %v3474_v58  ;;  %1315 = vrot.lane.b32.xlu1 %v1280_v53, %s2466_s26  ;;  %814 = vrot.lane.b32.xlu0 %v3474_v58, %s2464_s28  ;;  %v3496_v53 = vpop.permute.xlu1 %490 }
 0x240   : > { %4671 = vst [vmem:[#allocation105_spill] sm:$0xff] %v3496_v53 }
 0x241   : > { %v3481_v18 = vpop.permute.xlu0 %804 }
 0x242   : > { %v3491_v4 = vsel %vm480_vm6, %v3481_v18, %v4669_v17 }
 0x243   : > { %4670 = vst [vmem:[#allocation104_spill] sm:$0xff] %v3491_v4  ;;  %1331 = vrot.lane.b32.xlu1 %v1288_v16, %s2466_s26  ;;  %822 = vrot.lane.b32.xlu0 %v3491_v4, %s2464_s28  ;;  %v3519_v16 = vsel %vm480_vm6, %v3412_v63, %v2976_v22  ;;  %v3526_v7 = vpop.permute.xlu1 %502  ;;  %v4676_v22 = vsel %vm2919_vm3, %v2985_v20, 0.0  ;;  %v878_v12 = vmul.f32 %v2859_v39, %v3491_v4 }
 0x244   : > { %4674 = vst [vmem:[#allocation108_spill] sm:$0xff] %v3526_v7  ;;  %v693_v62 = vmul.f32 %v2857_v38, %v3519_v16 }
 0x245   : > { %v3498_v21 = vpop.permute.xlu0 %610 }
 0x246   : > { %4672 = vst [vmem:[#allocation106_spill] sm:$0xff] %v3498_v21  ;;  %v3508_v61 = vsel %vm480_vm6, %v3498_v21, %v2985_v20 }
 0x247   : > { %629 = vrot.lane.b32.xlu1 %v3503_v6, %s2464_s28  ;;  %631 = vrot.lane.b32.xlu0 %v3508_v61, %s2464_s28  ;;  %v3547_v14 = vpop.permute.xlu1 %795 }
 0x249   : > { %v3514_v17 = vpop.permute.xlu0 %622 }
 0x24a   : > { %4673 = vst [vmem:[#allocation107_spill] sm:$0xff] %v3514_v17  ;;  %v3524_v35 = vsel %vm480_vm6, %v3514_v17, %v2993_v24  ;;  %v3542_v17 = vsel %vm480_vm6, %v3496_v53, %v4676_v22 }
 0x24b   : > { %637 = vrot.lane.b32.xlu1 %v3519_v16, %s2464_s28  ;;  %639 = vrot.lane.b32.xlu0 %v3524_v35, %s2464_s28  ;;  %4677 = vst [vmem:[#allocation110_spill] sm:$0xff] %v3542_v17  ;;  %v3574_v53 = vpop.permute.xlu1 %807 }
 0x24d   : > { %v3534_v21 = vpop.permute.xlu0 %1182 }
 0x24e   : > { %4675 = vst [vmem:[#allocation109_spill] sm:$0xff] %v3534_v21  ;;  %v4679_v21 = vsel %vm2919_vm3, %v2993_v24, 0.0 }
 0x24f   : > { %721 = vrot.lane.b32.xlu0 %v685_v54, %s2467_s14  ;;  %511 = vrot.lane.b32.xlu1 %v3542_v17, %s2464_s28  ;;  %v3559_v22 = vsel %vm480_vm6, %v3526_v7, %v4679_v21  ;;  %v1007_v54 = vmul.f32 %v2867_v43, %v3442_v10  ;;  %v1015_v21 = vmul.f32 %v2889_v57, %v3459_v27 }
 0x250   : > { %4680 = vst [vmem:[#allocation112_spill] sm:$0xff] %v3559_v22 }
 0x251   : > { %v3551_v63 = vpop.permute.xlu0 %1198 }
 0x252   : > { %4678 = vst [vmem:[#allocation111_spill] sm:$0xff] %v3551_v63  ;;  %v4681_v63 = vsel %vm2925_vm4, %v2985_v20, 0.0  ;;  %v4684_v20 = vsel %vm2925_vm4, %v2993_v24, 0.0  ;;  %v695_v24 = vmul.f32 %v2845_v31, %v3524_v35  ;;  %v4699_v31 = vld [vmem:[#allocation34_spill] sm:$0xff] }
 0x253   : > { %737 = vrot.lane.b32.xlu0 %v693_v62, %s2467_s14  ;;  %519 = vrot.lane.b32.xlu1 %v3559_v22, %s2464_s28  ;;  %v3572_v8 = vsel %vm480_vm6, %v3547_v14, %v4681_v63  ;;  %v3589_v63 = vsel %vm480_vm6, %v3574_v53, %v4684_v20  ;;  %v1282_v20 = vmul.f32 %v3081_v13, %v3474_v58 }
 0x254   : > { %4682 = vst [vmem:[#allocation113_spill] sm:$0xff] %v3572_v8  ;;  %4685 = vst [vmem:[#allocation115_spill] sm:$0xff] %v3589_v63  ;;  %v872_v13 = vmul.f32 %v2865_v42, %v3572_v8 }
 0x255   : > { %v3579_v62 = vpop.permute.xlu0 %1317 }
 0x256   : > { %4683 = vst [vmem:[#allocation114_spill] sm:$0xff] %v3579_v62  ;;  %v870_v62 = vmul.f32 %v2853_v36, %v3474_v58 }
 0x257   : > { %1043 = vrot.lane.b32.xlu0 %v1007_v54, %s2468_s7  ;;  %816 = vrot.lane.b32.xlu1 %v3572_v8, %s2464_s28  ;;  %v687_v54 = vmul.f32 %v2841_v29, %v3508_v61  ;;  %v1480_v29 = vmul.f32 %v3218_v19, %v4699_v31  ;;  %v1483_v31 = vmul.f32 %v3207_v60, %v3503_v6 }
 0x259   : > { %v3598_v27 = vpop.permute.xlu0 %1333 }
 0x25a   : > { %4686 = vst [vmem:[#allocation116_spill] sm:$0xff] %v3598_v27 }
 0x25b   : > { %1059 = vrot.lane.b32.xlu0 %v1015_v21, %s2468_s7  ;;  %824 = vrot.lane.b32.xlu1 %v3589_v63, %s2464_s28  ;;  %s4341_s28 = scalar_lea.hbm %s4850_s5, %s2014_s29 }
 0x25d   : > { %v3608_v21 = vpop.permute.xlu0 %1186 }
 0x25e   : > { %4687 = vst [vmem:[#allocation117_spill] sm:$0xff] %v3608_v21 }
 0x25f   : > { %725 = vrot.lane.b32.xlu0 %v687_v54, %s2467_s14  ;;  %906 = vrot.lane.b32.xlu1 %v870_v62, %s2469_s15  ;;  %v1009_v54 = vmul.f32 %v2871_v45, %v3542_v17  ;;  %v1290_v62 = vmul.f32 %v3171_v25, %v3491_v4 }
 0x261   : > { %v3620_v27 = vpop.permute.xlu0 %1202 }
 0x262   : > { %4688 = vst [vmem:[#allocation118_spill] sm:$0xff] %v3620_v27  ;;  %v4692_v27 = vld [vmem:[#allocation20_spill] sm:$0xff] }
 0x263   : > { %741 = vrot.lane.b32.xlu0 %v695_v24, %s2467_s14  ;;  %922 = vrot.lane.b32.xlu1 %v878_v12, %s2469_s15  ;;  %v1017_v24 = vmul.f32 %v2879_v50, %v3559_v22  ;;  %v3622_v12 = vpop.permute.xlu1 %1184  ;;  %v4697_v22 = vmov 0   ;;  %v1724_v50 = vld [vmem:[#allocation8 + $0x30] sm:$0xff] }
 0x264   : > { %4689 = vst [vmem:[#allocation119_spill] sm:$0xff] %v3622_v12  ;;  %v4694_v12 = vld [vmem:[#allocation18_spill] sm:$0xff] }
 0x267   : > { %1319 = vrot.lane.b32.xlu1 %v1282_v20, %s2466_s26  ;;  %1047 = vrot.lane.b32.xlu0 %v1009_v54, %s2468_s7  ;;  %v3630_v20 = vpop.permute.xlu0 %1321  ;;  %v3632_v25 = vpop.permute.xlu1 %1200  ;;  %v880_v54 = vmul.f32 %v2873_v46, %v3589_v63 }
 0x268   : > { %4690 = vst [vmem:[#allocation120_spill] sm:$0xff] %v3630_v20  ;;  %4691 = vst [vmem:[#allocation121_spill] sm:$0xff] %v3632_v25  ;;  %v4696_v25 = vld [vmem:[#allocation19_spill] sm:$0xff] }
 0x26b   : > { %1335 = vrot.lane.b32.xlu1 %v1290_v62, %s2466_s26  ;;  %1063 = vrot.lane.b32.xlu0 %v1017_v24, %s2468_s7  ;;  %v3638_v62 = vpop.permute.xlu1 %1587  ;;  %v3640_v24 = vpop.permute.xlu0 %1337 }
 0x26c   : > { %4693 = vst [vmem:[#allocation20_spill] sm:$0xff] %v3640_v24 }
 0x26f   : > { %910 = vrot.lane.b32.xlu1 %v872_v13, %s2469_s15  ;;  %1595 = vperm.xlu0 %2193, %v2769_v15   ;;  %v4695_v13 = vld [vmem:[#allocation21_spill] sm:$0xff]  ;;  %v3646_v20 = vpop.permute.xlu1 %1591 }
 0x273   : > { %926 = vrot.lane.b32.xlu1 %v880_v54, %s2469_s15  ;;  %1603 = vperm.xlu0 %2193, %v4692_v27   ;;  %v4698_v54 = vld [vmem:[#allocation31_spill] sm:$0xff]  ;;  %v3655_v24 = vpop.permute.xlu1 %625 }
 0x274   : > { %v1478_v17 = vmul.f32 %v3199_v51, %v4698_v54  ;;  %v1292_v54 = vmul.f32 %v3126_v5, %v3589_v63  ;;  %v1722_v5 = vld [vmem:[#allocation8 + $0x20] sm:$0xff] }
 0x277   : > { %1599 = vperm.xlu1 %2194, %v4694_v12   ;;  %1611 = vperm.xlu0 %2193, %v4695_v13   ;;  %v1284_v12 = vmul.f32 %v3096_v3, %v3572_v8  ;;  %v1718_v3 = vld [vmem:[#allocation8] sm:$0xff]  ;;  %v1721_v8 = vld [vmem:[#allocation8 + $0x18] sm:$0xff] }
 0x27a   : > { %v3644_v21 = vpop.permute.xlu0 %1583 }
 0x27b   : > { %1607 = vperm.xlu1 %2194, %v4696_v25   ;;  %2195 = vset.pattern.permute.xlu0 %v4697_v22 }
 0x27c   : > { %531 = vperm.xlu0 %2195, %v2765_v11   ;;  %v3666_v11 = vpop.permute.xlu1 %633 }
 0x27e   : > { %v3653_v10 = vpop.permute.xlu0 %505 }
 0x27f   : > { %1510 = vrot.lane.b32.xlu1 %v1478_v17, %s2467_s14 }
 0x280   : > { %546 = vperm.xlu0 %2195, %v2769_v15   ;;  %2196 = vset.pattern.permute.xlu1 %v4697_v22  ;;  %v1719_v15 = vld [vmem:[#allocation8 + $0x8] sm:$0xff] }
 0x282   : > { %v3662_v25 = vpop.permute.xlu0 %513 }
 0x283   : > { %1323 = vrot.lane.b32.xlu1 %v1284_v12, %s2466_s26 }
 0x284   : > { %556 = vperm.xlu0 %2195, %v4692_v27   ;;  %v1720_v27 = vld [vmem:[#allocation8 + $0x10] sm:$0xff] }
 0x286   : > { %v3670_v4 = vpop.permute.xlu0 %810 }
 0x287   : > { %1339 = vrot.lane.b32.xlu1 %v1292_v54, %s2466_s26  ;;  %s2471_s26 = smov [#allocation10]  }
 0x288   : > { %566 = vperm.xlu0 %2195, %v4695_v13   ;;  %v1723_v13 = vld [vmem:[#allocation8 + $0x28] sm:$0xff] }
 0x289   : > { %v3674_v17 = vpop.permute.xlu1 %507 }
 0x28a   : > { %v3676_v22 = vpop.permute.xlu0 %818 }
 0x28b   : > { %1733 = vperm.xlu1 %2196, %v1719_v15   ;;  %v1725_v15 = vld [vmem:[#allocation8 + $0x38] sm:$0xff] }
 0x28c   : > { %1728 = vperm.xlu0 %2195, %v1718_v3  }
 0x28d   : > { %v3678_v12 = vpop.permute.xlu1 %515 }
 0x28e   : > { %v3680_v58 = vpop.permute.xlu0 %627 }
 0x28f   : > { %1738 = vperm.xlu1 %2196, %v1720_v27   ;;  %v1479_v27 = vmul.f32 %v3199_v51, %v3243_v2 }
 0x290   : > { %1743 = vperm.xlu0 %2195, %v1721_v8  }
 0x291   : > { %v3682_v54 = vpop.permute.xlu1 %812 }
 0x292   : > { %v3684_v63 = vpop.permute.xlu0 %635 }
 0x293   : > { %1748 = vperm.xlu1 %2196, %v1722_v5   ;;  %v1481_v5 = vmul.f32 %v3218_v19, %v3313_v26 }
 0x294   : > { %1753 = vperm.xlu0 %2195, %v1723_v13  }
 0x295   : > { %v3686_v7 = vpop.permute.xlu1 %820 }
 0x296   : > { %v3688_v3 = vpop.permute.xlu0 %713 }
 0x297   : > { %1758 = vperm.xlu1 %2196, %v1724_v50   ;;  %v1482_v50 = vmul.f32 %v3207_v60, %v2957_v55 }
 0x298   : > { %1763 = vperm.xlu0 %2195, %v1725_v15   ;;  %v4702_v15 = vld [vmem:[#allocation62_spill] sm:$0xff] }
 0x299   : > { %v3692_v8 = vpop.permute.xlu1 %898  ;;  %v1485_v55 = vmul.f32 %v4702_v15, %v3508_v61 }
 0x29a   : > { %v3694_v45 = vpop.permute.xlu0 %729 }
 0x29b   : > { %1512 = vrot.lane.b32.xlu1 %v1479_v27, %s2467_s14 }
 0x29c   : > { %1514 = vrot.lane.b32.xlu0 %v1480_v29, %s2467_s14  ;;  %v4701_v29 = vld [vmem:[#allocation40_spill] sm:$0xff] }
 0x29d   : > { %v3702_v13 = vpop.permute.xlu1 %914  ;;  %v1484_v27 = vmul.f32 %v4702_v15, %v4701_v29  ;;  %v4708_v29 = vld [vmem:[#allocation36_spill] sm:$0xff] }
 0x29e   : > { %4700 = vst [vmem:[#allocation18_spill] sm:$0xff] %v3702_v13  ;;  %v3706_v51 = vpop.permute.xlu0 %1035 }
 0x29f   : > { %1516 = vrot.lane.b32.xlu1 %v1481_v5, %s2467_s14  ;;  %v4704_v5 = vld [vmem:[#allocation32_spill] sm:$0xff] }
 0x2a0   : > { %1518 = vrot.lane.b32.xlu0 %v1482_v50, %s2467_s14  ;;  %v4705_v50 = vld [vmem:[#allocation64_spill] sm:$0xff] }
 0x2a1   : > { %v3712_v2 = vpop.permute.xlu1 %1311  ;;  %v1486_v13 = vmul.f32 %v4705_v50, %v4704_v5  ;;  %v1487_v6 = vmul.f32 %v4705_v50, %v3264_v56  ;;  %v4711_v5 = vld [vmem:[#allocation66_spill] sm:$0xff] }
 0x2a2   : > { %v3716_v19 = vpop.permute.xlu0 %1051  ;;  %v1491_v50 = vmul.f32 %v4711_v5, %v3519_v16 }
 0x2a3   : > { %4703 = vst [vmem:[#allocation21_spill] sm:$0xff] %v3716_v19  ;;  %1520 = vrot.lane.b32.xlu1 %v1483_v31, %s2467_s14 }
 0x2a4   : > { %1522 = vrot.lane.b32.xlu0 %v1484_v27, %s2467_s14  ;;  %v4709_v27 = vld [vmem:[#allocation63_spill] sm:$0xff] }
 0x2a5   : > { %v3722_v26 = vpop.permute.xlu1 %1327  ;;  %v1488_v19 = vmul.f32 %v4709_v27, %v4708_v29  ;;  %v1489_v15 = vmul.f32 %v4709_v27, %v3324_v48  ;;  %v4713_v29 = vld [vmem:[#allocation65_spill] sm:$0xff] }
 0x2a6   : > { %v3726_v60 = vpop.permute.xlu0 %717  ;;  %v1493_v27 = vmul.f32 %v4713_v29, %v3524_v35  ;;  %v4718_v35 = vld [vmem:[#allocation67_spill] sm:$0xff] }
 0x2a7   : > { %4706 = vst [vmem:[#allocation19_spill] sm:$0xff] %v3726_v60  ;;  %1524 = vrot.lane.b32.xlu1 %v1485_v55, %s2467_s14 }
 0x2a8   : > { %1526 = vrot.lane.b32.xlu0 %v1486_v13, %s2467_s14  ;;  %v4710_v13 = vld [vmem:[#allocation37_spill] sm:$0xff] }
 0x2a9   : > { %v3732_v31 = vpop.permute.xlu1 %902  ;;  %v1490_v60 = vmul.f32 %v4711_v5, %v4710_v13  ;;  %v4717_v5 = vld [vmem:[#allocation74_spill] sm:$0xff] }
 0x2aa   : > { %4707 = vst [vmem:[#allocation31_spill] sm:$0xff] %v3732_v31  ;;  %v3736_v61 = vpop.permute.xlu0 %733 }
 0x2ab   : > { %1528 = vrot.lane.b32.xlu1 %v1487_v6, %s2467_s14 }
 0x2ac   : > { %1530 = vrot.lane.b32.xlu0 %v1488_v19, %s2467_s14  ;;  %v4712_v19 = vld [vmem:[#allocation39_spill] sm:$0xff] }
 0x2ad   : > { %v3742_v55 = vpop.permute.xlu1 %918  ;;  %v1492_v31 = vmul.f32 %v4713_v29, %v4712_v19  ;;  %v826_v19 = vsel %vm480_vm6, %v3670_v4, %v4717_v5  ;;  %v641_v29 = vsel %vm480_vm6, %v3655_v24, %v4718_v35 }
 0x2ae   : > { %v3746_v56 = vpop.permute.xlu0 %1039 }
 0x2af   : > { %1532 = vrot.lane.b32.xlu1 %v1489_v15, %s2467_s14 }
 0x2b0   : > { %1534 = vrot.lane.b32.xlu0 %v1490_v60, %s2467_s14  ;;  %v4716_v60 = vld [vmem:[#allocation38_spill] sm:$0xff] }
 0x2b1   : > { %v3752_v6 = vpop.permute.xlu1 %1315  ;;  %v1614_v13 = vmul.f32 %v3644_v21, %v4716_v60  ;;  %v867_v60 = vmul.f32 %v2861_v40, %v826_v19  ;;  %v827_v19 = vsel %vm480_vm6, %v3682_v54, %v3317_v0  ;;  %v831_v0 = vsel %vm480_vm6, %v3686_v7, %v3330_v23 }
 0x2b2   : > { %v3756_v48 = vpop.permute.xlu0 %1055 }
 0x2b3   : > { %4714 = vst [vmem:[#allocation34_spill] sm:$0xff] %v3756_v48  ;;  %1536 = vrot.lane.b32.xlu1 %v1491_v50, %s2467_s14  ;;  %v4719_v48 = vld [vmem:[#allocation76_spill] sm:$0xff] }
 0x2b4   : > { %1538 = vrot.lane.b32.xlu0 %v1492_v31, %s2467_s14  ;;  %v1615_v31 = vmul.f32 %v3644_v21, %v3288_v1  ;;  %v830_v4 = vsel %vm480_vm6, %v3676_v22, %v4719_v48 }
 0x2b5   : > { %v3762_v15 = vpop.permute.xlu1 %1331  ;;  %v875_v40 = vmul.f32 %v2855_v37, %v830_v4  ;;  %v869_v37 = vmul.f32 %v2849_v33, %v827_v19  ;;  %v877_v33 = vmul.f32 %v2869_v44, %v831_v0  ;;  %v4724_v4 = vld [vmem:[#allocation79_spill] sm:$0xff] }
 0x2b6   : > { %4715 = vst [vmem:[#allocation40_spill] sm:$0xff] %v3762_v15  ;;  %v3766_v16 = vpop.permute.xlu0 %509 }
 0x2b7   : > { %1540 = vrot.lane.b32.xlu1 %v1493_v27, %s2467_s14  ;;  %v4720_v27 = vld [vmem:[#allocation26_spill] sm:$0xff] }
 0x2b8   : > { %1646 = vrot.lane.b32.xlu0 %v1614_v13, %s2469_s15  ;;  %v682_v1 = vmul.f32 %v4720_v27, %v641_v29  ;;  %v4721_v13 = vld [vmem:[#allocation70_spill] sm:$0xff]  ;;  %v4723_v29 = vld [vmem:[#allocation71_spill] sm:$0xff]  ;;  %v642_v27 = vsel %vm480_vm6, %v3680_v58, %v4724_v4  ;;  %v4732_v4 = vld [vmem:[#allocation100_spill] sm:$0xff] }
 0x2b9   : > { %v3775_v50 = vpop.permute.xlu1 %629  ;;  %v645_v24 = vsel %vm480_vm6, %v3666_v11, %v4721_v13  ;;  %v4725_v13 = vld [vmem:[#allocation80_spill] sm:$0xff] }
 0x2ba   : > { %v3781_v15 = vpop.permute.xlu0 %517  ;;  %v690_v22 = vmul.f32 %v2851_v34, %v645_v24 }
 0x2bb   : > { %1648 = vrot.lane.b32.xlu1 %v1615_v31, %s2469_s15  ;;  %v4722_v31 = vld [vmem:[#allocation68_spill] sm:$0xff] }
 0x2bc   : > { %900 = vrot.lane.b32.xlu0 %v867_v60, %s2469_s15  ;;  %v3806_v35 = vsel %vm480_vm6, %v3653_v10, %v4722_v31  ;;  %v3821_v10 = vsel %vm480_vm6, %v3662_v25, %v4723_v29  ;;  %v4730_v29 = vld [vmem:[#allocation93_spill] sm:$0xff] }
 0x2bd   : > { %v3789_v21 = vpop.permute.xlu1 %637  ;;  %v1004_v34 = vmul.f32 %v2863_v41, %v3806_v35  ;;  %v1012_v41 = vmul.f32 %v2881_v52, %v3821_v10  ;;  %v646_v52 = vsel %vm480_vm6, %v3684_v63, %v4725_v13 }
 0x2be   : > { %v815_v5 = vpop.permute.xlu0 %814 }
 0x2bf   : > { %715 = vrot.lane.b32.xlu1 %v682_v1, %s2467_s14  ;;  %v828_v7 = vsel %vm480_vm6, %v815_v5, %v3464_v9  ;;  %v684_v9 = vmul.f32 %v2847_v32, %v642_v27  ;;  %v4726_v5 = vld [vmem:[#allocation81_spill] sm:$0xff]  ;;  %v3915_v27 = vsel %vm480_vm6, %v3781_v15, %v4732_v4  ;;  %v4737_v15 = vld [vmem:[#allocation27_spill] sm:$0xff] }
 0x2c0   : > { %916 = vrot.lane.b32.xlu0 %v875_v40, %s2469_s15  ;;  %v871_v25 = vmul.f32 %v2853_v36, %v828_v7  ;;  %v3853_v32 = vsel %vm480_vm6, %v3674_v17, %v4726_v5 }
 0x2c1   : > { %v3801_v48 = vpop.permute.xlu1 %511 }
 0x2c2   : > { %v823_v11 = vpop.permute.xlu0 %822 }
 0x2c3   : > { %731 = vrot.lane.b32.xlu1 %v690_v22, %s2467_s14  ;;  %v832_v44 = vsel %vm480_vm6, %v823_v11, %v3481_v18  ;;  %v692_v18 = vmul.f32 %v2843_v30, %v646_v52  ;;  %v1006_v30 = vmul.f32 %v2877_v49, %v3853_v32  ;;  %v4727_v22 = vld [vmem:[#allocation78_spill] sm:$0xff]  ;;  %v643_v49 = vsel %vm480_vm6, %v3775_v50, %v3400_v59 }
 0x2c4   : > { %904 = vrot.lane.b32.xlu0 %v869_v37, %s2469_s15  ;;  %v879_v24 = vmul.f32 %v2859_v39, %v832_v44  ;;  %v3869_v17 = vsel %vm480_vm6, %v3678_v12, %v4727_v22  ;;  %v4728_v37 = vld [vmem:[#allocation43_spill] sm:$0xff]  ;;  %v4734_v44 = vld [vmem:[#allocation106_spill] sm:$0xff] }
 0x2c5   : > { %v3816_v54 = vpop.permute.xlu1 %519  ;;  %v1616_v11 = vmul.f32 %v3638_v62, %v4728_v37 }
 0x2c6   : > { %v632_v60 = vpop.permute.xlu0 %631 }
 0x2c7   : > { %1037 = vrot.lane.b32.xlu1 %v1004_v34, %s2468_s7  ;;  %v4729_v34 = vld [vmem:[#allocation52_spill] sm:$0xff] }
 0x2c8   : > { %920 = vrot.lane.b32.xlu0 %v877_v33, %s2469_s15  ;;  %v647_v33 = vsel %vm480_vm6, %v3789_v21, %v4730_v29 }
 0x2c9   : > { %v817_v23 = vpop.permute.xlu1 %816  ;;  %v694_v50 = vmul.f32 %v2857_v38, %v647_v33  ;;  %v4747_v33 = vld [vmem:[#allocation44_spill] sm:$0xff] }
 0x2ca   : > { %v640_v1 = vpop.permute.xlu0 %639  ;;  %v829_v36 = vsel %vm480_vm6, %v817_v23, %v3547_v14 }
 0x2cb   : > { %1053 = vrot.lane.b32.xlu1 %v1012_v41, %s2468_s7  ;;  %v873_v63 = vmul.f32 %v2865_v42, %v829_v36  ;;  %v4731_v41 = vld [vmem:[#allocation96_spill] sm:$0xff] }
 0x2cc   : > { %908 = vrot.lane.b32.xlu0 %v871_v25, %s2469_s15 }
 0x2cd   : > { %v825_v40 = vpop.permute.xlu1 %824 }
 0x2ce   : > { %v3843_v58 = vpop.permute.xlu0 %721  ;;  %v833_v19 = vsel %vm480_vm6, %v825_v40, %v3574_v53  ;;  %v1014_v53 = vmul.f32 %v2875_v47, %v3869_v17  ;;  %v1618_v47 = vmul.f32 %v3646_v20, %v4729_v34 }
 0x2cf   : > { %719 = vrot.lane.b32.xlu1 %v684_v9, %s2467_s14  ;;  %v881_v42 = vmul.f32 %v2873_v46, %v833_v19  ;;  %v686_v46 = vmul.f32 %v2839_v28, %v643_v49  ;;  %v3905_v28 = vsel %vm480_vm6, %v3766_v16, %v4731_v41  ;;  %v1016_v16 = vmul.f32 %v2889_v57, %v3915_v27  ;;  %v4740_v57 = vld [vmem:[#allocation28_spill] sm:$0xff] }
 0x2d0   : > { %924 = vrot.lane.b32.xlu0 %v879_v24, %s2469_s15  ;;  %v1008_v21 = vmul.f32 %v2867_v43, %v3905_v28  ;;  %v644_v9 = vsel %vm480_vm6, %v632_v60, %v4734_v44  ;;  %v4738_v24 = vld [vmem:[#allocation107_spill] sm:$0xff]  ;;  %v4741_v60 = vld [vmem:[#allocation105_spill] sm:$0xff] }
 0x2d1   : > { %v3861_v14 = vpop.permute.xlu1 %906  ;;  %v688_v52 = vmul.f32 %v4737_v15, %v644_v9  ;;  %v648_v40 = vsel %vm480_vm6, %v640_v1, %v4738_v24  ;;  %v524_v19 = vsel %vm480_vm6, %v3801_v48, %v4741_v60  ;;  %v4746_v48 = vld [vmem:[#allocation30_spill] sm:$0xff] }
 0x2d2   : > { %v3856_v39 = vpop.permute.xlu0 %737 }
 0x2d3   : > { %735 = vrot.lane.b32.xlu1 %v692_v18, %s2467_s14  ;;  %v4739_v18 = vld [vmem:[#allocation50_spill] sm:$0xff] }
 0x2d4   : > { %912 = vrot.lane.b32.xlu0 %v873_v63, %s2469_s15  ;;  %v696_v63 = vmul.f32 %v4740_v57, %v648_v40  ;;  %v4753_v57 = vld [vmem:[#allocation113_spill] sm:$0xff] }
 0x2d5   : > { %v3883_v12 = vpop.permute.xlu1 %922 }
 0x2d6   : > { %v3872_v31 = vpop.permute.xlu0 %1043 }
 0x2d7   : > { %1041 = vrot.lane.b32.xlu1 %v1006_v30, %s2468_s7 }
 0x2d8   : > { %928 = vrot.lane.b32.xlu0 %v881_v42, %s2469_s15  ;;  %v4743_v42 = vld [vmem:[#allocation29_spill] sm:$0xff] }
 0x2d9   : > { %v3898_v59 = vpop.permute.xlu1 %1319  ;;  %v1010_v1 = vmul.f32 %v4743_v42, %v524_v19 }
 0x2da   : > { %v3885_v0 = vpop.permute.xlu0 %1059 }
 0x2db   : > { %1057 = vrot.lane.b32.xlu1 %v1014_v53, %s2468_s7  ;;  %v4744_v53 = vld [vmem:[#allocation108_spill] sm:$0xff] }
 0x2dc   : > { %1650 = vrot.lane.b32.xlu0 %v1616_v11, %s2469_s15  ;;  %v3948_v37 = vsel %vm480_vm6, %v3816_v54, %v4744_v53 }
 0x2dd   : > { %v3917_v25 = vpop.permute.xlu1 %1335 }
 0x2de   : > { %v3895_v7 = vpop.permute.xlu0 %725 }
 0x2df   : > { %723 = vrot.lane.b32.xlu1 %v686_v46, %s2467_s14  ;;  %v4745_v46 = vld [vmem:[#allocation41_spill] sm:$0xff] }
 0x2e0   : > { %1654 = vrot.lane.b32.xlu0 %v1618_v47, %s2469_s15  ;;  %v1018_v47 = vmul.f32 %v4746_v48, %v3948_v37 }
 0x2e1   : > { %v3929_v43 = vpop.permute.xlu1 %910 }
 0x2e2   : > { %v3907_v23 = vpop.permute.xlu0 %741  ;;  %4736 = vst [vmem:[#allocation64_spill] sm:$0xff] %v3929_v43 }
 0x2e3   : > { %739 = vrot.lane.b32.xlu1 %v694_v50, %s2467_s14 }
 0x2e5   : > { %v3941_v30 = vpop.permute.xlu1 %926 }
 0x2e6   : > { %v3919_v38 = vpop.permute.xlu0 %1047  ;;  %4742 = vst [vmem:[#allocation36_spill] sm:$0xff] %v3941_v30 }
 0x2e7   : > { %4733 = vst [vmem:[#allocation62_spill] sm:$0xff] %v3919_v38  ;;  %1045 = vrot.lane.b32.xlu1 %v1008_v21, %s2468_s7  ;;  %v4748_v21 = vld [vmem:[#allocation87_spill] sm:$0xff]  ;;  %v4776_v38 = vld [vmem:[#allocation73_spill] sm:$0xff] }
 0x2e8   : > { %v1617_v54 = vmul.f32 %v3638_v62, %v4748_v21  ;;  %v4752_v62 = vld [vmem:[#allocation53_spill] sm:$0xff]  ;;  %v4763_v21 = vld [vmem:[#allocation115_spill] sm:$0xff] }
 0x2ea   : > { %v3926_v13 = vpop.permute.xlu0 %1063 }
 0x2eb   : > { %4735 = vst [vmem:[#allocation32_spill] sm:$0xff] %v3926_v13  ;;  %1061 = vrot.lane.b32.xlu1 %v1016_v16, %s2468_s7  ;;  %v4749_v16 = vld [vmem:[#allocation54_spill] sm:$0xff]  ;;  %v4774_v13 = vld [vmem:[#allocation72_spill] sm:$0xff] }
 0x2ee   : > { %v1596_v36 = vpop.permute.xlu0 %1595 }
 0x2ef   : > { %v1620_v5 = vmul.f32 %v1596_v36, %v4739_v18  ;;  %727 = vrot.lane.b32.xlu1 %v688_v52, %s2467_s14  ;;  %v4750_v52 = vld [vmem:[#allocation102_spill] sm:$0xff] }
 0x2f0   : > { %v1619_v24 = vmul.f32 %v3646_v20, %v4750_v52  ;;  %v4755_v20 = vld [vmem:[#allocation77_spill] sm:$0xff] }
 0x2f1   : > { %1658 = vrot.lane.b32.xlu0 %v1620_v5, %s2469_s15 }
 0x2f2   : > { %v1604_v22 = vpop.permute.xlu0 %1603 }
 0x2f3   : > { %743 = vrot.lane.b32.xlu1 %v696_v63, %s2467_s14  ;;  %v1624_v50 = vmul.f32 %v1604_v22, %v4747_v33  ;;  %v1621_v63 = vmul.f32 %v1596_v36, %v4753_v57  ;;  %s2319_s14 = sshll.u32 %s2471_s26, 4  ;;  %s2320_s14 = int_to_ptr.vmem [resolvable:$false] %s2319_s14 }
 0x2f4   : > { %p2322_p6 = scmp.lt.s32.totalorder %s4335_s3, %s2320_s14 }
 0x2f6   : > { %v1600_v11 = vpop.permute.xlu1 %1599  ;;  %v1612_v49 = vpop.permute.xlu0 %1611 }
 0x2f7   : > { %v1622_v34 = vmul.f32 %v1600_v11, %v4745_v46  ;;  %1049 = vrot.lane.b32.xlu1 %v1010_v1, %s2468_s7  ;;  %v1628_v18 = vmul.f32 %v1612_v49, %v4752_v62  ;;  %v1623_v42 = vmul.f32 %v1600_v11, %v4755_v20  ;;  %v4757_v46 = vld [vmem:[#allocation90_spill] sm:$0xff] }
 0x2f9   : > { %1662 = vrot.lane.b32.xlu0 %v1622_v34, %s2469_s15  ;;  %v1625_v34 = vmul.f32 %v1604_v22, %v4757_v46 }
 0x2fa   : > { %v1608_v29 = vpop.permute.xlu1 %1607 }
 0x2fb   : > { %1065 = vrot.lane.b32.xlu1 %v1018_v47, %s2468_s7  ;;  %v532_v41 = vpop.permute.xlu0 %531  ;;  %v1626_v44 = vmul.f32 %v1608_v29, %v4749_v16  ;;  %v4760_v47 = vld [vmem:[#allocation104_spill] sm:$0xff]  ;;  %s2321_s7 = scalar_lea.vmem %s2320_s14, 2048 }
 0x2fc   : > { %v1627_v33 = vmul.f32 %v1608_v29, %v4760_v47  ;;  %p2323_p10 = scmp.lt.s32.totalorder %s2321_s7, %s2315_s9 }
 0x2fd   : > { %1666 = vrot.lane.b32.xlu0 %v1624_v50, %s2469_s15 }
 0x2fe   : > { %v3960_v4 = vpop.permute.xlu1 %1510  ;;  %p2324_p11 = por %p2323_p10, %p2322_p6 }
 0x2ff   : > { %1652 = vrot.lane.b32.xlu1 %v1617_v54, %s2469_s15  ;;  %v3964_v9 = vpop.permute.xlu0 %546  ;;  %v1629_v54 = vmul.f32 %v1612_v49, %v4763_v21 }
 0x300   : > { %v3967_v15 = vmul.f32 %v3964_v9, %v524_v19  ;;  %p2325_p5 = pnand %p2324_p11, %p2318_p13 }
 0x301   : > { %1670 = vrot.lane.b32.xlu0 %v1626_v44, %s2469_s15 }
 0x302   : > { %v3972_v40 = vpop.permute.xlu1 %1323 }
 0x303   : > { %4751 = vst [vmem:[#allocation63_spill] sm:$0xff] %v3972_v40  ;;  %1656 = vrot.lane.b32.xlu1 %v1619_v24, %s2469_s15  ;;  %v3976_v5 = vpop.permute.xlu0 %556 }
 0x305   : > { %1674 = vrot.lane.b32.xlu0 %v1628_v18, %s2469_s15 }
 0x306   : > { %v3980_v60 = vpop.permute.xlu1 %1339 }
 0x307   : > { %4754 = vst [vmem:[#allocation37_spill] sm:$0xff] %v3980_v60  ;;  %1660 = vrot.lane.b32.xlu1 %v1621_v63, %s2469_s15  ;;  %v3983_v19 = vpop.permute.xlu0 %566  ;;  %v4773_v60 = vld [vmem:[#allocation24_spill] sm:$0xff] }
 0x308   : > { %v577_v40 = vmul.f32 %v4773_v60, %v4774_v13 }
 0x30a   : > { %v3986_v1 = vpop.permute.xlu1 %1733 }
 0x30b   : > { %4756 = vst [vmem:[#allocation66_spill] sm:$0xff] %v3986_v1  ;;  %1664 = vrot.lane.b32.xlu1 %v1623_v42, %s2469_s15  ;;  %v3989_v53 = vpop.permute.xlu0 %1728 }
 0x30e   : > { %v3992_v48 = vpop.permute.xlu1 %1738 }
 0x30f   : > { %4758 = vst [vmem:[#allocation39_spill] sm:$0xff] %v3992_v48  ;;  %1668 = vrot.lane.b32.xlu1 %v1625_v34, %s2469_s15  ;;  %v3995_v36 = vpop.permute.xlu0 %1743  ;;  %v570_v48 = vmul.f32 %v532_v41, %v3806_v35 }
 0x310   : > { %4759 = vst [vmem:[#allocation65_spill] sm:$0xff] %v3995_v36 }
 0x312   : > { %v3998_v50 = vpop.permute.xlu1 %1748 }
 0x313   : > { %4761 = vst [vmem:[#allocation38_spill] sm:$0xff] %v3998_v50  ;;  %1672 = vrot.lane.b32.xlu1 %v1627_v33, %s2469_s15  ;;  %v4001_v11 = vpop.permute.xlu0 %1753 }
 0x314   : > { %4762 = vst [vmem:[#allocation74_spill] sm:$0xff] %v4001_v11  ;;  %v4772_v11 = vld [vmem:[#allocation69_spill] sm:$0xff] }
 0x315   : > { %v569_v1 = vmul.f32 %v532_v41, %v4772_v11 }
 0x316   : > { %v4004_v16 = vpop.permute.xlu1 %1758 }
 0x317   : > { %4764 = vst [vmem:[#allocation67_spill] sm:$0xff] %v4004_v16  ;;  %1676 = vrot.lane.b32.xlu1 %v1629_v54, %s2469_s15  ;;  %v4007_v22 = vpop.permute.xlu0 %1763 }
 0x318   : > { %4765 = vst [vmem:[#allocation76_spill] sm:$0xff] %v4007_v22 }
 0x31a   : > { %v4009_v44 = vpop.permute.xlu1 %1512 }
 0x31b   : > { %v1515_v52 = vpop.permute.xlu0 %1514 }
 0x31e   : > { %v4011_v24 = vpop.permute.xlu1 %1516 }
 0x31f   : > { %v4015_v29 = vsel %vm745_vm7, %v1515_v52, %v4011_v24  ;;  %v4017_v62 = vpop.permute.xlu0 %1518 }
 0x322   : > { %v4019_v18 = vpop.permute.xlu1 %1520 }
 0x323   : > { %v4021_v49 = vpop.permute.xlu0 %1522 }
 0x324   : > { %4766 = vst [vmem:[#allocation26_spill] sm:$0xff] %v4021_v49 }
 0x326   : > { %v4023_v57 = vpop.permute.xlu1 %1524 }
 0x327   : > { %4767 = vst [vmem:[#allocation70_spill] sm:$0xff] %v4023_v57  ;;  %v1527_v63 = vpop.permute.xlu0 %1526 }
 0x32a   : > { %v4025_v20 = vpop.permute.xlu1 %1528 }
 0x32b   : > { %v4029_v42 = vsel %vm745_vm7, %v1527_v63, %v4025_v20  ;;  %v1531_v46 = vpop.permute.xlu0 %1530 }
 0x32e   : > { %v4031_v34 = vpop.permute.xlu1 %1532 }
 0x32f   : > { %v4035_v47 = vsel %vm745_vm7, %v1531_v46, %v4031_v34  ;;  %v1535_v33 = vpop.permute.xlu0 %1534 }
 0x332   : > { %v4037_v21 = vpop.permute.xlu1 %1536 }
 0x333   : > { %4768 = vst [vmem:[#allocation68_spill] sm:$0xff] %v4037_v21  ;;  %v4041_v54 = vsel %vm745_vm7, %v1535_v33, %v4037_v21  ;;  %v4043_v52 = vpop.permute.xlu0 %1538 }
 0x334   : > { %4769 = vst [vmem:[#allocation71_spill] sm:$0xff] %v4041_v54  ;;  %4770 = vst [vmem:[#allocation79_spill] sm:$0xff] %v4043_v52  ;;  %v578_v52 = vmul.f32 %v4773_v60, %v3821_v10  ;;  %v4777_v54 = vld [vmem:[#allocation18_spill] sm:$0xff] }
 0x336   : > { %v4045_v22 = vpop.permute.xlu1 %1540 }
 0x337   : > { %4771 = vst [vmem:[#allocation80_spill] sm:$0xff] %v4045_v22  ;;  %v1647_v63 = vpop.permute.xlu0 %1646 }
 0x33a   : > { %v1649_v36 = vpop.permute.xlu1 %1648 }
 0x33b   : > { %v901_v50 = vpop.permute.xlu0 %900 }
 0x33e   : > { %v716_v16 = vpop.permute.xlu1 %715 }
 0x33f   : > { %v746_v46 = vsel %vm745_vm7, %v3688_v3, %v716_v16  ;;  %v771_v49 = vadd.f32 %v716_v16, %v570_v48  ;;  %v931_v3 = vsel %vm930_vm8, %v3692_v8, %v901_v50  ;;  %v917_v48 = vpop.permute.xlu0 %916 }
 0x340   : > { %v770_v57 = vadd.f32 %v746_v46, %v569_v1  ;;  %v935_v21 = vsel %vm930_vm8, %v4777_v54, %v917_v48  ;;  %v4782_v54 = vld [vmem:[#allocation86_spill] sm:$0xff] }
 0x341   : > { %v956_v41 = vadd.f32 %v901_v50, %v771_v49  ;;  %v4778_v50 = vld [vmem:[#allocation89_spill] sm:$0xff] }
 0x342   : > { %v732_v33 = vpop.permute.xlu1 %731  ;;  %v955_v46 = vadd.f32 %v931_v3, %v770_v57 }
 0x343   : > { %v750_v22 = vsel %vm745_vm7, %v3694_v45, %v732_v33  ;;  %v779_v35 = vadd.f32 %v732_v33, %v578_v52  ;;  %v4775_v45 = vld [vmem:[#allocation83_spill] sm:$0xff] }
 0x344   : > { %v778_v16 = vadd.f32 %v750_v22, %v577_v40  ;;  %v1205_v60 = vsel %vm1204_vm10, %v4776_v38, %v4775_v45  ;;  %v1342_v40 = vsel %vm1341_vm11, %v4778_v50, %v3712_v2  ;;  %v4785_v45 = vld [vmem:[#allocation22_spill] sm:$0xff] }
 0x345   : > { %v964_v52 = vadd.f32 %v917_v48, %v779_v35  ;;  %v4783_v35 = vld [vmem:[#allocation75_spill] sm:$0xff] }
 0x346   : > { %v1038_v1 = vpop.permute.xlu1 %1037  ;;  %v963_v57 = vadd.f32 %v935_v21, %v778_v16  ;;  %v1209_v48 = vsel %vm1204_vm10, %v4783_v35, %v4782_v54 }
 0x347   : > { %v1068_v10 = vsel %vm1067_vm9, %v3706_v51, %v1038_v1  ;;  %v1093_v30 = vadd.f32 %v1038_v1, %v956_v41  ;;  %v4779_v51 = vld [vmem:[#allocation57_spill] sm:$0xff] }
 0x348   : > { %v1092_v43 = vadd.f32 %v1068_v10, %v955_v46  ;;  %v1415_v33 = vmul.f32 %v4779_v51, %v4772_v11  ;;  %v4780_v41 = vld [vmem:[#allocation21_spill] sm:$0xff] }
 0x349   : > { %v1230_v8 = vadd.f32 %v1205_v60, %v1093_v30  ;;  %v4781_v10 = vld [vmem:[#allocation33_spill] sm:$0xff]  ;;  %v572_v60 = vmul.f32 %v4785_v45, %v3853_v32 }
 0x34a   : > { %v1229_v22 = vadd.f32 %v4776_v38, %v1092_v43  ;;  %v1054_v49 = vpop.permute.xlu1 %1053  ;;  %v1414_v30 = vmul.f32 %v4779_v51, %v4781_v10  ;;  %v4784_v43 = vld [vmem:[#allocation56_spill] sm:$0xff] }
 0x34b   : > { %v1367_v3 = vadd.f32 %v1342_v40, %v1230_v8  ;;  %v1072_v1 = vsel %vm1067_vm9, %v4780_v41, %v1054_v49  ;;  %v1101_v46 = vadd.f32 %v1054_v49, %v964_v52  ;;  %v1423_v21 = vmul.f32 %v4784_v43, %v4774_v13  ;;  %v4786_v8 = vld [vmem:[#allocation91_spill] sm:$0xff]  ;;  %v905_v41 = vpop.permute.xlu0 %904 }
 0x34c   : > { %v1366_v2 = vadd.f32 %v4778_v50, %v1229_v22  ;;  %v1100_v38 = vadd.f32 %v1072_v1, %v963_v57  ;;  %v1346_v52 = vsel %vm1341_vm11, %v4786_v8, %v3722_v26  ;;  %v1542_v50 = vsel %vm745_vm7, %v3960_v4, %v4009_v44  ;;  %v4787_v57 = vld [vmem:[#allocation19_spill] sm:$0xff] }
 0x34d   : > { %v1431_v16 = vadd.f32 %v1415_v33, %v1367_v3  ;;  %v1238_v11 = vadd.f32 %v1209_v48, %v1101_v46  ;;  %v4788_v3 = vld [vmem:[#allocation35_spill] sm:$0xff]  ;;  %v4789_v46 = vld [vmem:[#allocation82_spill] sm:$0xff] }
 0x34e   : > { %v1430_v40 = vadd.f32 %v1414_v30, %v1366_v2  ;;  %v1237_v49 = vadd.f32 %v4783_v35, %v1100_v38  ;;  %v720_v51 = vpop.permute.xlu1 %719  ;;  %v1422_v32 = vmul.f32 %v4784_v43, %v4788_v3  ;;  %v571_v10 = vmul.f32 %v4785_v45, %v4789_v46  ;;  %v4790_v45 = vld [vmem:[#allocation84_spill] sm:$0xff] }
 0x34f   : > { %v1567_v22 = vadd.f32 %v4009_v44, %v1431_v16  ;;  %v1375_v13 = vadd.f32 %v1346_v52, %v1238_v11  ;;  %v747_v33 = vsel %vm745_vm7, %v4787_v57, %v720_v51  ;;  %v1678_v30 = vsel %vm930_vm8, %v1647_v63, %v1649_v36 }
 0x350   : > { %v1566_v1 = vadd.f32 %v1542_v50, %v1430_v40  ;;  %v1374_v26 = vadd.f32 %v4786_v8, %v1237_v49  ;;  %v773_v54 = vadd.f32 %v720_v51, %v572_v60  ;;  %v772_v44 = vadd.f32 %v747_v33, %v571_v10  ;;  %v4791_v60 = vld [vmem:[#allocation31_spill] sm:$0xff]  ;;  %v921_v40 = vpop.permute.xlu0 %920  ;;  %v4793_v50 = vld [vmem:[#allocation85_spill] sm:$0xff] }
 0x351   : > { %v1703_v4 = vadd.f32 %v1649_v36, %v1567_v22  ;;  %v1439_v35 = vadd.f32 %v1423_v21, %v1375_v13  ;;  %v580_v16 = vmul.f32 %v3976_v5, %v3869_v17  ;;  %v579_v63 = vmul.f32 %v3976_v5, %v4790_v45 }
 0x352   : > { %v736_v48 = vpop.permute.xlu1 %735  ;;  %v1702_v2 = vadd.f32 %v1678_v30, %v1566_v1  ;;  %v1438_v38 = vadd.f32 %v1422_v32, %v1374_v26  ;;  %v932_v52 = vsel %vm930_vm8, %v4791_v60, %v905_v41  ;;  %v936_v57 = vsel %vm930_vm8, %v3742_v55, %v921_v40  ;;  %v4794_v32 = vld [vmem:[#allocation95_spill] sm:$0xff]  ;;  %v4801_v60 = vld [vmem:[#allocation40_spill] sm:$0xff] }
 0x353   : > { %v751_v43 = vsel %vm745_vm7, %v3736_v61, %v736_v48  ;;  %v1767_v11 = vadd.f32 %v3989_v53, %v1703_v4  ;;  %v4106_v8 = vadd.f32 %v4025_v20, %v1439_v35  ;;  %v781_v17 = vadd.f32 %v736_v48, %v580_v16  ;;  %v4796_v4 = vld [vmem:[#allocation34_spill] sm:$0xff]  ;;  %v4797_v48 = vld [vmem:[#allocation45_spill] sm:$0xff] }
 0x354   : > { %v1766_v36 = vadd.f32 %v3989_v53, %v1702_v2  ;;  %v4112_v21 = vadd.f32 %v4029_v42, %v1438_v38  ;;  %v958_v61 = vadd.f32 %v905_v41, %v773_v54  ;;  %v780_v49 = vadd.f32 %v751_v43, %v579_v63  ;;  %v4792_v42 = vld [vmem:[#allocation92_spill] sm:$0xff]  ;;  %v4798_v2 = vld [vmem:[#allocation94_spill] sm:$0xff] }
 0x355   : > { %1800 = vrot.lane.b32.xlu1 %v1767_v11, %s2470_s10  ;;  %v957_v51 = vadd.f32 %v932_v52, %v772_v44  ;;  %v1206_v22 = vsel %vm1204_vm10, %v4793_v50, %v4792_v42  ;;  %v966_v3 = vadd.f32 %v921_v40, %v781_v17  ;;  %v1343_v41 = vsel %vm1341_vm11, %v4794_v32, %v3752_v6  ;;  %v4799_v38 = vld [vmem:[#allocation88_spill] sm:$0xff]  ;;  %v4802_v52 = vld [vmem:[#allocation97_spill] sm:$0xff] }
 0x356   : > { %v1042_v20 = vpop.permute.xlu1 %1041  ;;  %1798 = vrot.lane.b32.xlu0 %v1766_v36, %s2470_s10  ;;  %v965_v10 = vadd.f32 %v936_v57, %v780_v49  ;;  %v1210_v16 = vsel %vm1204_vm10, %v4799_v38, %v4798_v2  ;;  %v4800_v36 = vld [vmem:[#allocation60_spill] sm:$0xff]  ;;  %v1347_v17 = vsel %vm1341_vm11, %v4802_v52, %v4801_v60  ;;  %v4805_v57 = vld [vmem:[#allocation98_spill] sm:$0xff] }
 0x357   : > { %v1069_v5 = vsel %vm1067_vm9, %v3746_v56, %v1042_v20  ;;  %v1095_v53 = vadd.f32 %v1042_v20, %v958_v61  ;;  %v4795_v56 = vld [vmem:[#allocation51_spill] sm:$0xff] }
 0x358   : > { %v1094_v13 = vadd.f32 %v1069_v5, %v957_v51  ;;  %v1417_v30 = vmul.f32 %v4795_v56, %v4789_v46  ;;  %v1416_v55 = vmul.f32 %v4795_v56, %v4797_v48  ;;  %v1425_v46 = vmul.f32 %v4800_v36, %v4790_v45  ;;  %v4803_v20 = vld [vmem:[#allocation23_spill] sm:$0xff] }
 0x359   : > { %v1232_v33 = vadd.f32 %v1206_v22, %v1095_v53  ;;  %v574_v51 = vmul.f32 %v4803_v20, %v3905_v28  ;;  %v909_v22 = vpop.permute.xlu0 %908 }
 0x35a   : > { %v1231_v1 = vadd.f32 %v4793_v50, %v1094_v13  ;;  %v1058_v26 = vpop.permute.xlu1 %1057  ;;  %v4804_v50 = vld [vmem:[#allocation42_spill] sm:$0xff] }
 0x35b   : > { %v1369_v54 = vadd.f32 %v1343_v41, %v1232_v33  ;;  %v1073_v35 = vsel %vm1067_vm9, %v4796_v4, %v1058_v26  ;;  %v1103_v44 = vadd.f32 %v1058_v26, %v966_v3  ;;  %v1424_v45 = vmul.f32 %v4800_v36, %v4804_v50 }
 0x35c   : > { %v1368_v6 = vadd.f32 %v4794_v32, %v1231_v1  ;;  %v1102_v43 = vadd.f32 %v1073_v35, %v965_v10  ;;  %v573_v33 = vmul.f32 %v4803_v20, %v4805_v57  ;;  %v933_v4 = vsel %vm930_vm8, %v3861_v14, %v909_v22  ;;  %v4812_v20 = vld [vmem:[#allocation46_spill] sm:$0xff] }
 0x35d   : > { %v1240_v11 = vadd.f32 %v1210_v16, %v1103_v44  ;;  %v1433_v63 = vadd.f32 %v1417_v30, %v1369_v54  ;;  %v4807_v30 = vld [vmem:[#allocation101_spill] sm:$0xff]  ;;  %v925_v48 = vpop.permute.xlu0 %924  ;;  %v4809_v16 = vld [vmem:[#allocation99_spill] sm:$0xff] }
 0x35e   : > { %v1239_v61 = vadd.f32 %v4799_v38, %v1102_v43  ;;  %v724_v40 = vpop.permute.xlu1 %723  ;;  %v1432_v49 = vadd.f32 %v1416_v55, %v1368_v6  ;;  %v4808_v38 = vld [vmem:[#allocation109_spill] sm:$0xff] }
 0x35f   : > { %v1377_v5 = vadd.f32 %v1347_v17, %v1240_v11  ;;  %v748_v53 = vsel %vm745_vm7, %v3843_v58, %v724_v40  ;;  %v4150_v42 = vadd.f32 %v4011_v24, %v1433_v63  ;;  %v775_v28 = vadd.f32 %v724_v40, %v574_v51  ;;  %v4806_v24 = vld [vmem:[#allocation25_spill] sm:$0xff]  ;;  %v4810_v63 = vld [vmem:[#allocation114_spill] sm:$0xff]  ;;  %v4813_v51 = vld [vmem:[#allocation111_spill] sm:$0xff] }
 0x360   : > { %v1376_v13 = vadd.f32 %v4802_v52, %v1239_v61  ;;  %v4158_v3 = vadd.f32 %v4015_v29, %v1432_v49  ;;  %v774_v41 = vadd.f32 %v748_v53, %v573_v33  ;;  %v582_v26 = vmul.f32 %v4806_v24, %v3915_v27 }
 0x361   : > { %v1441_v32 = vadd.f32 %v1425_v46, %v1377_v5  ;;  %v581_v54 = vmul.f32 %v4806_v24, %v4807_v30  ;;  %v960_v44 = vadd.f32 %v909_v22, %v775_v28  ;;  %v1207_v6 = vsel %vm1204_vm10, %v4809_v16, %v4808_v38  ;;  %v4814_v5 = vld [vmem:[#allocation103_spill] sm:$0xff] }
 0x362   : > { %v740_v1 = vpop.permute.xlu1 %739  ;;  %v1440_v58 = vadd.f32 %v1424_v45, %v1376_v13  ;;  %v959_v2 = vadd.f32 %v933_v4, %v774_v41  ;;  %v1344_v36 = vsel %vm1341_vm11, %v4810_v63, %v3898_v59  ;;  %v1211_v53 = vsel %vm1204_vm10, %v4814_v5, %v4813_v51  ;;  %v913_v59 = vpop.permute.xlu0 %912  ;;  %v4816_v41 = vld [vmem:[#allocation58_spill] sm:$0xff]  ;;  %v4827_v51 = vld [vmem:[#allocation63_spill] sm:$0xff] }
 0x363   : > { %v752_v10 = vsel %vm745_vm7, %v3856_v39, %v740_v1  ;;  %v4165_v56 = vadd.f32 %v4031_v34, %v1441_v32  ;;  %v783_v35 = vadd.f32 %v740_v1, %v582_v26  ;;  %v1427_v1 = vmul.f32 %v4816_v41, %v4807_v30  ;;  %v4818_v4 = vld [vmem:[#allocation110_spill] sm:$0xff] }
 0x364   : > { %v4170_v29 = vadd.f32 %v4035_v47, %v1440_v58  ;;  %v782_v55 = vadd.f32 %v752_v10, %v581_v54  ;;  %v937_v47 = vsel %vm930_vm8, %v3883_v12, %v925_v48  ;;  %v1544_v58 = vsel %vm745_vm7, %v4017_v62, %v4019_v18  ;;  %v4817_v10 = vld [vmem:[#allocation49_spill] sm:$0xff] }
 0x365   : > { %v968_v14 = vadd.f32 %v925_v48, %v783_v35  ;;  %v1426_v54 = vmul.f32 %v4816_v41, %v4817_v10 }
 0x366   : > { %v1046_v27 = vpop.permute.xlu1 %1045  ;;  %v967_v52 = vadd.f32 %v937_v47, %v782_v55  ;;  %v929_v55 = vpop.permute.xlu0 %928 }
 0x367   : > { %v1070_v39 = vsel %vm1067_vm9, %v3872_v31, %v1046_v27  ;;  %v1097_v34 = vadd.f32 %v1046_v27, %v960_v44  ;;  %v4811_v31 = vld [vmem:[#allocation55_spill] sm:$0xff] }
 0x368   : > { %v1096_v43 = vadd.f32 %v1070_v39, %v959_v2  ;;  %v1419_v17 = vmul.f32 %v4811_v31, %v4805_v57  ;;  %v1418_v12 = vmul.f32 %v4811_v31, %v4812_v20  ;;  %v4815_v57 = vld [vmem:[#allocation116_spill] sm:$0xff]  ;;  %v4825_v31 = vld [vmem:[#allocation119_spill] sm:$0xff] }
 0x369   : > { %v1234_v11 = vadd.f32 %v1207_v6, %v1097_v34  ;;  %v1348_v33 = vsel %vm1341_vm11, %v4815_v57, %v3917_v25  ;;  %v575_v25 = vmul.f32 %v3964_v9, %v4818_v4  ;;  %v4819_v34 = vld [vmem:[#allocation68_spill] sm:$0xff]  ;;  %v4821_v6 = vld [vmem:[#allocation71_spill] sm:$0xff] }
 0x36a   : > { %v1233_v46 = vadd.f32 %v4809_v16, %v1096_v43  ;;  %v1062_v60 = vpop.permute.xlu1 %1061  ;;  %v4820_v9 = vld [vmem:[#allocation112_spill] sm:$0xff] }
 0x36b   : > { %v1371_v61 = vadd.f32 %v1344_v36, %v1234_v11  ;;  %v1074_v40 = vsel %vm1067_vm9, %v3885_v0, %v1062_v60  ;;  %v1105_v49 = vadd.f32 %v1062_v60, %v968_v14  ;;  %v583_v16 = vmul.f32 %v3983_v19, %v4820_v9 }
 0x36c   : > { %v1370_v50 = vadd.f32 %v4810_v63, %v1233_v46  ;;  %v1104_v45 = vadd.f32 %v1074_v40, %v967_v52  ;;  %v4823_v46 = vld [vmem:[#allocation62_spill] sm:$0xff]  ;;  %v4824_v52 = vld [vmem:[#allocation117_spill] sm:$0xff]  ;;  %v4826_v40 = vld [vmem:[#allocation36_spill] sm:$0xff] }
 0x36d   : > { %v1242_v22 = vadd.f32 %v1211_v53, %v1105_v49  ;;  %v4195_v13 = vadd.f32 %v1419_v17, %v1371_v61  ;;  %v1208_v17 = vsel %vm1204_vm10, %v4825_v31, %v4824_v52  ;;  %v938_v49 = vsel %vm930_vm8, %v4826_v40, %v929_v55 }
 0x36e   : > { %v1241_v0 = vadd.f32 %v4814_v5, %v1104_v45  ;;  %v728_v28 = vpop.permute.xlu1 %727  ;;  %v1434_v32 = vadd.f32 %v1418_v12, %v1370_v50  ;;  %v4828_v5 = vld [vmem:[#allocation120_spill] sm:$0xff] }
 0x36f   : > { %v1379_v24 = vadd.f32 %v1348_v33, %v1242_v22  ;;  %v749_v26 = vsel %vm745_vm7, %v3895_v7, %v728_v28  ;;  %v777_v30 = vadd.f32 %v728_v28, %v3967_v15  ;;  %v584_v7 = vmul.f32 %v3983_v19, %v3948_v37  ;;  %v4822_v15 = vld [vmem:[#allocation64_spill] sm:$0xff]  ;;  %v1651_v19 = vpop.permute.xlu0 %1650  ;;  %v4830_v28 = vld [vmem:[#allocation47_spill] sm:$0xff] }
 0x370   : > { %v1378_v35 = vadd.f32 %v4815_v57, %v1241_v0  ;;  %v4213_v44 = vadd.f32 %v1544_v58, %v1434_v32  ;;  %v776_v27 = vadd.f32 %v749_v26, %v575_v25  ;;  %v934_v47 = vsel %vm930_vm8, %v4822_v15, %v913_v59  ;;  %v4829_v57 = vld [vmem:[#allocation32_spill] sm:$0xff]  ;;  %v4831_v32 = vld [vmem:[#allocation59_spill] sm:$0xff]  ;;  %v4833_v58 = vld [vmem:[#allocation121_spill] sm:$0xff] }
 0x371   : > { %v1443_v48 = vadd.f32 %v1427_v1, %v1379_v24  ;;  %v962_v14 = vadd.f32 %v913_v59, %v777_v30  ;;  %v1345_v53 = vsel %vm1341_vm11, %v4828_v5, %v4827_v51  ;;  %v1420_v41 = vmul.f32 %v4831_v32, %v4830_v28  ;;  %v4832_v1 = vld [vmem:[#allocation118_spill] sm:$0xff]  ;;  %v4834_v25 = vld [vmem:[#allocation37_spill] sm:$0xff] }
 0x372   : > { %v744_v62 = vpop.permute.xlu1 %743  ;;  %v1442_v2 = vadd.f32 %v1426_v54, %v1378_v35  ;;  %v961_v37 = vadd.f32 %v934_v47, %v776_v27  ;;  %v1212_v24 = vsel %vm1204_vm10, %v4833_v58, %v4832_v1  ;;  %v4835_v35 = vld [vmem:[#allocation20_spill] sm:$0xff]  ;;  %v4842_v51 = vld [vmem:[#allocation38_spill] sm:$0xff] }
 0x373   : > { %v753_v39 = vsel %vm745_vm7, %v3907_v23, %v744_v62  ;;  %v4221_v38 = vadd.f32 %v4819_v34, %v1443_v48  ;;  %v785_v11 = vadd.f32 %v744_v62, %v584_v7  ;;  %v1349_v30 = vsel %vm1341_vm11, %v4835_v35, %v4834_v25  ;;  %v1655_v48 = vpop.permute.xlu0 %1654  ;;  %v4837_v7 = vld [vmem:[#allocation26_spill] sm:$0xff] }
 0x374   : > { %v4226_v43 = vadd.f32 %v4821_v6, %v1442_v2  ;;  %v784_v63 = vadd.f32 %v753_v39, %v583_v16  ;;  %v4836_v2 = vld [vmem:[#allocation70_spill] sm:$0xff]  ;;  %v4838_v16 = vld [vmem:[#allocation48_spill] sm:$0xff]  ;;  %v4839_v6 = vld [vmem:[#allocation61_spill] sm:$0xff] }
 0x375   : > { %v970_v12 = vadd.f32 %v929_v55, %v785_v11  ;;  %v1545_v39 = vsel %vm745_vm7, %v4837_v7, %v4836_v2  ;;  %v1428_v15 = vmul.f32 %v4839_v6, %v4838_v16 }
 0x376   : > { %v1050_v36 = vpop.permute.xlu1 %1049  ;;  %v969_v45 = vadd.f32 %v938_v49, %v784_v63 }
 0x377   : > { %v1071_v23 = vsel %vm1067_vm9, %v4823_v46, %v1050_v36  ;;  %v1099_v60 = vadd.f32 %v1050_v36, %v962_v14  ;;  %v4840_v36 = vld [vmem:[#allocation80_spill] sm:$0xff] }
 0x378   : > { %v1098_v61 = vadd.f32 %v1071_v23, %v961_v37  ;;  %v4841_v37 = vld [vmem:[#allocation79_spill] sm:$0xff]  ;;  %v1659_v23 = vpop.permute.xlu0 %1658 }
 0x379   : > { %v1236_v20 = vadd.f32 %v1208_v17, %v1099_v60  ;;  %v1549_v46 = vsel %vm745_vm7, %v4841_v37, %v4840_v36 }
 0x37a   : > { %v1235_v59 = vadd.f32 %v4825_v31, %v1098_v61  ;;  %v1066_v50 = vpop.permute.xlu1 %1065 }
 0x37b   : > { %v1373_v22 = vadd.f32 %v1345_v53, %v1236_v20  ;;  %v1075_v33 = vsel %vm1067_vm9, %v4829_v57, %v1066_v50  ;;  %v1107_v0 = vadd.f32 %v1066_v50, %v970_v12 }
 0x37c   : > { %v1372_v26 = vadd.f32 %v4828_v5, %v1235_v59  ;;  %v1106_v10 = vadd.f32 %v1075_v33, %v969_v45  ;;  %v1663_v31 = vpop.permute.xlu0 %1662 }
 0x37d   : > { %v1244_v54 = vadd.f32 %v1212_v24, %v1107_v0 }
 0x37e   : > { %v1243_v55 = vadd.f32 %v4833_v58, %v1106_v10  ;;  %v1653_v27 = vpop.permute.xlu1 %1652  ;;  %v1436_v62 = vadd.f32 %v1420_v41, %v1372_v26  ;;  %v1421_v41 = vmul.f32 %v4831_v32, %v4818_v4  ;;  %v4844_v58 = vld [vmem:[#allocation74_spill] sm:$0xff] }
 0x37f   : > { %v1381_v34 = vadd.f32 %v1349_v30, %v1244_v54  ;;  %v1679_v61 = vsel %vm930_vm8, %v1651_v19, %v1653_v27  ;;  %v1705_v12 = vadd.f32 %v1653_v27, %v4150_v42  ;;  %v4843_v19 = vld [vmem:[#allocation66_spill] sm:$0xff]  ;;  %v4845_v54 = vld [vmem:[#allocation39_spill] sm:$0xff] }
 0x380   : > { %v1380_v47 = vadd.f32 %v4835_v35, %v1243_v55  ;;  %v1572_v11 = vadd.f32 %v1545_v39, %v1436_v62  ;;  %v1667_v53 = vpop.permute.xlu0 %1666  ;;  %v1704_v59 = vadd.f32 %v1679_v61, %v4158_v3  ;;  %v1571_v3 = vadd.f32 %v4019_v18, %v4195_v13  ;;  %v4847_v39 = vld [vmem:[#allocation65_spill] sm:$0xff] }
 0x381   : > { %v1437_v10 = vadd.f32 %v1421_v41, %v1373_v22  ;;  %v1429_v13 = vmul.f32 %v4839_v6, %v4820_v9  ;;  %v4846_v9 = vld [vmem:[#allocation67_spill] sm:$0xff] }
 0x382   : > { %v1657_v14 = vpop.permute.xlu1 %1656  ;;  %v1444_v63 = vadd.f32 %v1428_v15, %v1380_v47  ;;  %v1768_v42 = vadd.f32 %v4843_v19, %v1704_v59  ;;  %v4848_v47 = vld [vmem:[#allocation76_spill] sm:$0xff] }
 0x383   : > { %v1680_v0 = vsel %vm930_vm8, %v1655_v48, %v1657_v14  ;;  %v1707_v1 = vadd.f32 %v1657_v14, %v1571_v3  ;;  %v1573_v35 = vadd.f32 %v4836_v2, %v1437_v10  ;;  %v1445_v30 = vadd.f32 %v1429_v13, %v1381_v34 }
 0x384   : > { %v1580_v60 = vadd.f32 %v1549_v46, %v1444_v63  ;;  %v1671_v24 = vpop.permute.xlu0 %1670  ;;  %v1706_v26 = vadd.f32 %v1680_v0, %v4213_v44 }
 0x385   : > { %v1771_v4 = vadd.f32 %v4845_v54, %v1707_v1 }
 0x386   : > { %v1661_v52 = vpop.permute.xlu1 %1660  ;;  %v1770_v25 = vadd.f32 %v4845_v54, %v1706_v26 }
 0x387   : > { %v1681_v22 = vsel %vm930_vm8, %v1659_v23, %v1661_v52  ;;  %v1709_v55 = vadd.f32 %v1661_v52, %v1573_v35 }
 0x388   : > { %v1675_v62 = vpop.permute.xlu0 %1674  ;;  %v1708_v7 = vadd.f32 %v1681_v22, %v1572_v11 }
 0x389   : > { %v1773_v34 = vadd.f32 %v4847_v39, %v1709_v55 }
 0x38a   : > { %v1665_v17 = vpop.permute.xlu1 %1664  ;;  %v1772_v6 = vadd.f32 %v4847_v39, %v1708_v7 }
 0x38b   : > { %v1682_v40 = vsel %vm930_vm8, %v1663_v31, %v1665_v17  ;;  %v1711_v49 = vadd.f32 %v1665_v17, %v4106_v8  ;;  %v1769_v8 = vadd.f32 %v4843_v19, %v1705_v12 }
 0x38c   : > { %v1710_v20 = vadd.f32 %v1682_v40, %v4112_v21 }
 0x38d   : > { %v1775_v5 = vadd.f32 %v4842_v51, %v1711_v49 }
 0x38e   : > { %v1774_v50 = vadd.f32 %v4842_v51, %v1710_v20  ;;  %v1669_v45 = vpop.permute.xlu1 %1668 }
 0x38f   : > { %v1683_v57 = vsel %vm930_vm8, %v1667_v53, %v1669_v45  ;;  %1816 = vrot.lane.b32.xlu1 %v1775_v5, %s2470_s10  ;;  %v1713_v21 = vadd.f32 %v1669_v45, %v4165_v56 }
 0x390   : > { %1814 = vrot.lane.b32.xlu0 %v1774_v50, %s2470_s10  ;;  %v1712_v33 = vadd.f32 %v1683_v57, %v4170_v29 }
 0x391   : > { %v1777_v56 = vadd.f32 %v4844_v58, %v1713_v21 }
 0x392   : > { %v1673_v28 = vpop.permute.xlu1 %1672  ;;  %v1776_v29 = vadd.f32 %v4844_v58, %v1712_v33 }
 0x393   : > { %1804 = vrot.lane.b32.xlu1 %v1769_v8, %s2470_s10  ;;  %v1684_v18 = vsel %vm930_vm8, %v1671_v24, %v1673_v28  ;;  %v1715_v32 = vadd.f32 %v1673_v28, %v4221_v38 }
 0x394   : > { %1802 = vrot.lane.b32.xlu0 %v1768_v42, %s2470_s10  ;;  %v1714_v44 = vadd.f32 %v1684_v18, %v4226_v43  ;;  %v1581_v43 = vadd.f32 %v4840_v36, %v1445_v30 }
 0x395   : > { %v1779_v27 = vadd.f32 %v4846_v9, %v1715_v32 }
 0x396   : > { %v1677_v48 = vpop.permute.xlu1 %1676  ;;  %v1778_v38 = vadd.f32 %v4846_v9, %v1714_v44 }
 0x397   : > { %1820 = vrot.lane.b32.xlu1 %v1777_v56, %s2470_s10  ;;  %v1685_v2 = vsel %vm930_vm8, %v1675_v62, %v1677_v48  ;;  %v1717_v16 = vadd.f32 %v1677_v48, %v1581_v43 }
 0x398   : > { %1818 = vrot.lane.b32.xlu0 %v1776_v29, %s2470_s10  ;;  %v1716_v15 = vadd.f32 %v1685_v2, %v1580_v60 }
 0x399   : > { %v1781_v11 = vadd.f32 %v4848_v47, %v1717_v16 }
 0x39a   : > { %v1780_v14 = vadd.f32 %v4848_v47, %v1716_v15 }
 0x39b   : > { %1808 = vrot.lane.b32.xlu1 %v1771_v4, %s2470_s10 }
 0x39c   : > { %1806 = vrot.lane.b32.xlu0 %v1770_v25, %s2470_s10 }
 0x39f   : > { %1824 = vrot.lane.b32.xlu1 %v1779_v27, %s2470_s10 }
 0x3a0   : > { %1822 = vrot.lane.b32.xlu0 %v1778_v38, %s2470_s10 }
 0x3a3   : > { %1812 = vrot.lane.b32.xlu1 %v1773_v34, %s2470_s10 }
 0x3a4   : > { %1810 = vrot.lane.b32.xlu0 %v1772_v6, %s2470_s10 }
 0x3a7   : > { %1828 = vrot.lane.b32.xlu1 %v1781_v11, %s2470_s10 }
 0x3a8   : > { %1826 = vrot.lane.b32.xlu0 %v1780_v14, %s2470_s10 }
 0x3c7   : > { %v1801_v63 = vpop.permute.xlu1 %1800 }
 0x3c8   : > { %v1799_v36 = vpop.permute.xlu0 %1798 }
 0x3c9   : > { %v1831_v37 = vsel %vm1830_vm12, %v1799_v36, %v1801_v63 }
 0x3ca   : > { %1847 = vst [vmem:[%s4318_s4] sm:$0xff] %v1831_v37 }
 0x401   : > { %v1817_v46 = vpop.permute.xlu1 %1816 }
 0x402   : > { %v1815_v23 = vpop.permute.xlu0 %1814 }
 0x403   : > { %v1835_v60 = vsel %vm1830_vm12, %v1815_v23, %v1817_v46 }
 0x404   : > { %1851 = vst [vmem:[%s4318_s4 + $0x20] sm:$0xff] %v1835_v60 }
 0x405   : > { %v1805_v52 = vpop.permute.xlu1 %1804 }
 0x406   : > { %v1803_v31 = vpop.permute.xlu0 %1802 }
 0x407   : > { %v1832_v17 = vsel %vm1830_vm12, %v1803_v31, %v1805_v52 }
 0x408   : > { %1848 = vst [vmem:[%s4318_s4 + $0x8] sm:$0xff] %v1832_v17 }
 0x409   : > { %v1821_v61 = vpop.permute.xlu1 %1820 }
 0x40a   : > { %v1819_v40 = vpop.permute.xlu0 %1818 }
 0x40b   : > { %v1836_v49 = vsel %vm1830_vm12, %v1819_v40, %v1821_v61 }
 0x40c   : > { %1852 = vst [vmem:[%s4318_s4 + $0x28] sm:$0xff] %v1836_v49 }
 0x40d   : > { %v1809_v20 = vpop.permute.xlu1 %1808 }
 0x40e   : > { %v1807_v12 = vpop.permute.xlu0 %1806 }
 0x40f   : > { %v1833_v51 = vsel %vm1830_vm12, %v1807_v12, %v1809_v20 }
 0x410   : > { %1849 = vst [vmem:[%s4318_s4 + $0x10] sm:$0xff] %v1833_v51 }
 0x411   : > { %v1825_v5 = vpop.permute.xlu1 %1824 }
 0x412   : > { %v1823_v53 = vpop.permute.xlu0 %1822 }
 0x413   : > { %v1837_v59 = vsel %vm1830_vm12, %v1823_v53, %v1825_v5 }
 0x414   : > { %1853 = vst [vmem:[%s4318_s4 + $0x30] sm:$0xff] %v1837_v59 }
 0x415   : > { %v1813_v50 = vpop.permute.xlu1 %1812 }
 0x416   : > { %v1811_v45 = vpop.permute.xlu0 %1810 }
 0x417   : > { %v1834_v57 = vsel %vm1830_vm12, %v1811_v45, %v1813_v50 }
 0x418   : > { %1850 = vst [vmem:[%s4318_s4 + $0x18] sm:$0xff] %v1834_v57 }
 0x419   : > { %v1829_v19 = vpop.permute.xlu1 %1828 }
 0x41a   : > { %v1827_v8 = vpop.permute.xlu0 %1826 }
 0x41b   : > { %v1838_v21 = vsel %vm1830_vm12, %v1827_v8, %v1829_v19 }
 0x41c   : > { %1854 = vst [vmem:[%s4318_s4 + $0x38] sm:$0xff] %v1838_v21 }
 0x41d   : > { %2328 = shalt.err (!%p2325_p5)
}
 0x41e   : > { %s2329_s15 = scalar_lea.hbm %s4341_s28, 1024  ;;  %s2333_s30 = scalar_lea.hbm %s4850_s5, 4096 }
 0x41f   : > { %p2330_p8 = scmp.ne.s32.totalorder %s4341_s28, %s2329_s15  ;;  %p2334_p9 = scmp.lt.u32.totalorder %s4341_s28, %s4850_s5 }
 0x420   : > { %p2335_p7 = scmp.lt.u32.totalorder %s2333_s30, %s2329_s15  ;;  %p2337_p3 = scmp.lt.u32.totalorder %s2329_s15, %s4341_s28 }
 0x421   : > { %p2331_p12 = pnand %p2330_p8, %p4851_p1 }
 0x422   : > { %p2336_p0 = por %p2335_p7, %p2334_p9 }
 0x423   : > { %p2332_p2 = pneg %p2331_p12 }
 0x424   : > { %p2338_p4 = por %p2337_p3, %p2336_p0 }
 0x426   : > { %p2339_p13 = pnand %p2338_p4, %p2332_p2 }
 0x428   : > { %2342 = shalt.err (!%p2339_p13)
}
 0x429   : > { %s2472_s18 = smov 128   ;;  %s2473_s29 = smov 256  }
 0x42a   : > { %s2474_s22 = smov 8  }
 0x42b   : > { %2036 = dma.vmem_to_hbm [thread:$0]  (%p4851_p1), %s4335_s3, 1024, %s4341_s28, %s4347_s21, %s2472_s18, %s2473_s29, %s2474_s22  }
 0x42c PF: > { %s4852_s6 = sld [smem:[#allocation15_spill]]  ;;  %s4853_s9 = sld [smem:[#allocation17_spill]] }
 0x42d   : > { %p2063_p6 = scmp.ge.s32.totalorder %s2445_s25, 2 }
 0x432   : > { %s1885_s26 = sand.u32 1, %s4852_s6   ;;  %p4854_p10 = scmp.ne.s32.totalorder %s4853_s9, 0 }
 0x433   : > { %s1886_s14 = scalar_lea.sflag [#allocation4], %s1885_s26 }
 0x434   : > { %p2053_p11 = pnand %p2063_p6, %p4854_p10 }
 0x436   : > { %2400 = dma.done.wait (!%p2053_p11), %s1886_s14, 1024  }
 0x437   : > { %2402 = vsyncadd (!%p2053_p11), %s1886_s14, 4294966272  ;;  %s22_s25 = sadd.s32 1, %s2445_s25   ;;  %s4855_s15 = smov %s2409_s16 }
 0x438   : > { %p19_p5 = scmp.ge.s32.totalorder %s22_s25, 6   ;;  %s4856_s16 = smov %s2413_s17 }
 0x439   : > { %s4857_s17 = smov %s2686_s8  ;;  %s4858_s18 = smov %s2421_s19 }
 0x43a   : > { %s4859_s19 = smov %s2425_s20  ;;  %s4860_s20 = smov %s2683_s12 }
 0x43b   : > { %s4861_s21 = smov %s2437_s23  ;;  %s4862_s22 = smov %s2441_s24 }
 0x43c   : > { %s4863_s23 = smov %s4866_s1  ;;  %s4864_s24 = smov %s4870_s27 }
 0x43d   :  { %21 = sbr.rel (!%p19_p5) target bundleno = 16 (0x10), region = 94 }
 0x444   :  { %1891 = vsyncpa [#allocation3], 1 }
 0x445   :  { %1893 = vsyncpa [#allocation3 + $0x1], 1 }
 0x446   :  { %1894 = vsyncpa [#allocation6], 1 }
 0x447   :  { %1895 = vsyncpa [#allocation9], 1 }
 0x448   :  { %1896 = vsyncpa [#allocation4], 1 }
 0x449   :  { %1898 = vsyncpa [#allocation4 + $0x1], 1 }

</bundles_post_ra>
